<compile_context>
chip_gen: v7x
topology: tpu7x:2x2x1
jax: 0.10.0
libtpu: 0.0.40
codegen_flags: <defaults>
</compile_context>

<pallas_src>
import functools

import jax
import jax.numpy as jnp
from jax import lax
from jax.experimental import pallas as pl
from jax.experimental.pallas import tpu as pltpu

LN_EPS = 1e-5                      # torch.nn.LayerNorm default eps


# -------------------------------------------------------------------------------------
# small helpers
# -------------------------------------------------------------------------------------
_VMEM_LIMIT_CACHE = None


def _vmem_limit_bytes():
    """Generation-aware scoped-VMEM cap: ~3/4 of physical, capped at 100 MiB.
    v5e/v6e (128 MiB) -> 96 MiB, v7x (64 MiB) -> 48 MiB."""
    global _VMEM_LIMIT_CACHE
    if _VMEM_LIMIT_CACHE is None:
        try:
            cap = pltpu.get_tpu_info().vmem_capacity_bytes
        except Exception:
            cap = 64 * 1024 * 1024
        _VMEM_LIMIT_CACHE = int(min((cap * 3) // 4, 100 * 1024 * 1024))
    return _VMEM_LIMIT_CACHE


def _pick_tile(total, cap, prefs):
    """Largest tile <= cap that divides `total`, preferring the given granularities.
    Falls back to the full extent (always a legal block)."""
    cap = max(1, min(cap, total))
    for g in prefs:
        t = (cap // g) * g
        while t >= g:
            if total % t == 0:
                return t
            t -= g
    return total


def _spec(block_shape, index_map, *, invariant=False):
    """BlockSpec; grid-invariant operands are single-buffered (halves their VMEM)."""
    if invariant:
        try:
            return pl.BlockSpec(block_shape, index_map, pipeline_mode=pl.Buffered(1))
        except Exception:     # older JAX without pipeline_mode / Buffered
            pass
    return pl.BlockSpec(block_shape, index_map)


def _gelu_tanh(x):
    # tanh-form GELU: the transcendental goes to the EUP slot (VALU stays free on v6e/v7x).
    # Max deviation from torch's exact erf GELU ~1e-3; negligible vs. the bf16 matmul noise.
    c = 0.7978845608028654  # sqrt(2/pi)
    return 0.5 * x * (1.0 + jnp.tanh(c * (x + 0.044715 * (x * x * x))))


# -------------------------------------------------------------------------------------
# Kernel 1: fused LayerNorm -> nested input-mask -> matmul (+ optional GELU)   ("expand")
# grid = (token tiles, output-column tiles); LN result cached in VMEM scratch at j == 0
# -------------------------------------------------------------------------------------
def _ln_expand_kernel(x_ref, g_ref, b_ref, w_ref, bias_ref, inlim_ref, o_ref, xn_ref,
                      *, apply_gelu):
    @pl.when(pl.program_id(1) == 0)
    def _():
        x = x_ref[...].astype(jnp.float32)
        mu = jnp.mean(x, axis=-1, keepdims=True)
        xc = x - mu
        var = jnp.mean(xc * xc, axis=-1, keepdims=True)
        h = xc * lax.rsqrt(var + LN_EPS) * g_ref[...] + b_ref[...]
        hb = h.astype(jnp.bfloat16)
        # nested-expert input slice: token t only uses features j < in_lim[t]
        # (mask applied after the bf16 cast -> half-width select)
        idx = lax.broadcasted_iota(jnp.int32, hb.shape, 1)
        xn_ref[...] = jnp.where(idx < inlim_ref[...], hb, jnp.zeros_like(hb))

    # MXU matmul: bf16 operands, f32 accumulation; weight streams as a (Din, TN) slab
    y = jnp.dot(xn_ref[...], w_ref[...], preferred_element_type=jnp.float32) + bias_ref[...]
    if apply_gelu:
        y = _gelu_tanh(y)
    o_ref[...] = y.astype(o_ref.dtype)


def ln_nested_expand(x2d, gamma, beta, w, b, in_lim, *, apply_gelu, tm, tn, out_dtype):
    """out = [gelu]( mask_in(LN(x)) @ W + b ).  W is (Din, Dout), bf16."""
    T, Din = x2d.shape
    Dout = w.shape[1]
    assert T % tm == 0
    TN = _pick_tile(Dout, tn, prefs=(128,))
    n_col = Dout // TN
    resident = (n_col == 1)          # weight fully resident -> single-buffer it
    kern = functools.partial(_ln_expand_kernel, apply_gelu=apply_gelu)
    return pl.pallas_call(
        kern,
        out_shape=jax.ShapeDtypeStruct((T, Dout), out_dtype),
        grid=(T // tm, n_col),
        in_specs=[pl.BlockSpec((tm, Din), lambda i, j: (i, 0)),
                  _spec((1, Din), lambda i, j: (0, 0), invariant=True),     # gamma
                  _spec((1, Din), lambda i, j: (0, 0), invariant=True),     # beta
                  _spec((Din, TN), lambda i, j: (0, j), invariant=resident),  # weight
                  _spec((1, TN), lambda i, j: (0, j), invariant=resident),    # bias
                  pl.BlockSpec((tm, 1), lambda i, j: (i, 0))],              # per-token limit
        out_specs=pl.BlockSpec((tm, TN), lambda i, j: (i, j)),
        scratch_shapes=[pltpu.VMEM((tm, Din), jnp.bfloat16)],               # cached LN(x)
        compiler_params=pltpu.CompilerParams(
            dimension_semantics=("parallel", "arbitrary"),
            vmem_limit_bytes=_vmem_limit_bytes()),
    )(x2d, gamma.reshape(1, Din), beta.reshape(1, Din), w, b.reshape(1, Dout), in_lim)


# -------------------------------------------------------------------------------------
# Kernel 2: multi-head attention on the fused bf16 (N, 3D) qkv slab, one batch per step
# -------------------------------------------------------------------------------------
def _attention_kernel(qkv_ref, o_ref, *, num_heads, head_dim, scale):
    D = num_heads * head_dim
    hd = head_dim
    qkv = qkv_ref[0]                               # (N, 3D) bf16 -- no f32 whole-slab upcast
    for h in range(num_heads):                     # static, small H
        q = qkv[:, h * hd:(h + 1) * hd] * scale            # scale folded into bf16 q
        k = qkv[:, D + h * hd:D + (h + 1) * hd]
        v = qkv[:, 2 * D + h * hd:2 * D + (h + 1) * hd]
        s = lax.dot_general(q, k, (((1,), (1,)), ((), ())),
                            preferred_element_type=jnp.float32)     # (N, N) f32
        m = jnp.max(s, axis=-1, keepdims=True)
        p = jnp.exp(s - m)                                           # EUP
        l = jnp.sum(p, axis=-1, keepdims=True)
        o = jnp.dot(p.astype(jnp.bfloat16), v, preferred_element_type=jnp.float32)
        # per-head lane store (no end-of-kernel concatenate / extra live accumulators)
        o_ref[0, :, h * hd:(h + 1) * hd] = (o * pl.reciprocal(l, approx=True)).astype(o_ref.dtype)


def attention(qkv_bnd, *, num_heads, head_dim, scale):
    """qkv_bnd: (B, N, 3D) laid out as [3, H, hd] on the last dim; returns (B, N, D)."""
    B, N, threeD = qkv_bnd.shape
    D = num_heads * head_dim
    kern = functools.partial(_attention_kernel, num_heads=num_heads,
                             head_dim=head_dim, scale=scale)
    return pl.pallas_call(
        kern,
        out_shape=jax.ShapeDtypeStruct((B, N, D), qkv_bnd.dtype),
        grid=(B,),
        in_specs=[pl.BlockSpec((1, N, threeD), lambda i: (i, 0, 0))],
        out_specs=pl.BlockSpec((1, N, D), lambda i: (i, 0, 0)),
        compiler_params=pltpu.CompilerParams(
            dimension_semantics=("parallel",),
            vmem_limit_bytes=_vmem_limit_bytes()),
    )(qkv_bnd)


# -------------------------------------------------------------------------------------
# Kernel 3: matmul -> nested output-mask (folded into scale) -> + residual    ("contract")
# grid = (token tiles, output-column tiles); weight streams as (Din, TN) slabs
# -------------------------------------------------------------------------------------
def _contract_residual_kernel(*refs, apply_scale, tn):
    if apply_scale:
        x_ref, w_ref, bias_ref, outlim_ref, res_ref, s_ref, o_ref = refs
    else:
        x_ref, w_ref, bias_ref, outlim_ref, res_ref, o_ref = refs
        s_ref = None
    y = jnp.dot(x_ref[...].astype(jnp.bfloat16), w_ref[...],
                preferred_element_type=jnp.float32) + bias_ref[...]
    # nested-expert output slice folded into the per-token scale: one select + one multiply
    col0 = pl.program_id(1) * tn
    idx = col0 + lax.broadcasted_iota(jnp.int32, y.shape, 1)
    s = s_ref[...].astype(jnp.float32) if apply_scale else 1.0
    mult = jnp.where(idx < outlim_ref[...], s, 0.0)
    o_ref[...] = (res_ref[...].astype(jnp.float32) + y * mult).astype(o_ref.dtype)


def nested_contract_residual(x2d, w, b, out_lim, residual, scale, *, tm, tn, out_dtype):
    """out = residual + [scale *] mask_out(x @ W + b).  W is (Din, Dout), bf16."""
    T, Din = x2d.shape
    Dout = w.shape[1]
    assert T % tm == 0
    TN = _pick_tile(Dout, tn, prefs=(128,))
    n_col = Dout // TN
    resident = (n_col == 1)
    apply_scale = scale is not None
    in_specs = [pl.BlockSpec((tm, Din), lambda i, j: (i, 0)),
                _spec((Din, TN), lambda i, j: (0, j), invariant=resident),   # weight
                _spec((1, TN), lambda i, j: (0, j), invariant=resident),     # bias
                pl.BlockSpec((tm, 1), lambda i, j: (i, 0)),                  # out_lim
                pl.BlockSpec((tm, TN), lambda i, j: (i, j))]                 # residual
    args = [x2d, w, b.reshape(1, Dout), out_lim, residual]
    if apply_scale:
        in_specs.append(pl.BlockSpec((tm, 1), lambda i, j: (i, 0)))
        args.append(scale)
    kern = functools.partial(_contract_residual_kernel, apply_scale=apply_scale, tn=TN)
    return pl.pallas_call(
        kern,
        out_shape=jax.ShapeDtypeStruct((T, Dout), out_dtype),
        grid=(T // tm, n_col),
        in_specs=in_specs,
        out_specs=pl.BlockSpec((tm, TN), lambda i, j: (i, j)),
        compiler_params=pltpu.CompilerParams(
            dimension_semantics=("parallel", "arbitrary"),
            vmem_limit_bytes=_vmem_limit_bytes()),
    )(*args)


# -------------------------------------------------------------------------------------
# Parameter preparation (done ONCE): torch (Dout, Din) -> (Din, Dout), bf16 matmul weights.
# -------------------------------------------------------------------------------------
def prepare_params(torch_params):
    p = dict(torch_params)
    for k in ("qkv_w", "proj_w", "fc1_w", "fc2_w"):
        p[k] = jnp.asarray(torch_params[k]).T.astype(jnp.bfloat16)
    return p


# -------------------------------------------------------------------------------------
# NestedExpertsBlock forward (Pallas kernels + free reshapes only)
# -------------------------------------------------------------------------------------
def nested_experts_block_forward(params, x, expert_mask, expert_probs, *,
                                 num_experts=4, num_heads=4, alpha=1.0,
                                 tm=512, tn=1024, residual_dtype=jnp.float32):
    """tm: token-tile cap (sweep 512-1024 on v5e/v6e, <=512 on v7x); tn: column-tile cap.
    residual_dtype=bf16 halves the HBM-bound proj/fc2 residual traffic on v7x."""
    B, N, D = x.shape
    T = B * N
    H = num_heads
    hd = D // H
    TM = _pick_tile(T, tm, prefs=(16, 8))   # always divides T (ragged shapes handled)

    x2 = x.reshape(T, D)
    em = expert_mask.reshape(T).astype(jnp.int32)
    # expert m keeps the first D // 2**(E-1-m) features of its token
    dim_lim = (D // (2 ** (num_experts - 1 - em))).astype(jnp.int32).reshape(T, 1)

    # ---- x_attn = x + attn(norm1(x))            (ls1/drop_path1 = Identity)
    qkv = ln_nested_expand(x2, params["ln1_g"], params["ln1_b"],
                           params["qkv_w"], params["qkv_b"], dim_lim,
                           apply_gelu=False, tm=TM, tn=tn, out_dtype=jnp.bfloat16)  # (T, 3D)
    a = attention(qkv.reshape(B, N, 3 * D), num_heads=H, head_dim=hd,
                  scale=hd ** -0.5)                                                 # (B, N, D)
    x_attn = nested_contract_residual(a.reshape(T, D), params["proj_w"], params["proj_b"],
                                      dim_lim, x2, None, tm=TM, tn=tn,
                                      out_dtype=residual_dtype)                     # (T, D)

    # ---- x = x_attn + (alpha * expert_probs + 1) * mlp(norm2(x_attn))
    hmid = ln_nested_expand(x_attn, params["ln2_g"], params["ln2_b"],
                            params["fc1_w"], params["fc1_b"], dim_lim,
                            apply_gelu=True, tm=TM, tn=tn, out_dtype=jnp.bfloat16)  # (T, hid)
    s = (alpha * expert_probs.reshape(T, 1) + 1.0).astype(jnp.float32)
    out = nested_contract_residual(hmid, params["fc2_w"], params["fc2_b"],
                                   dim_lim, x_attn, s, tm=TM, tn=tn,
                                   out_dtype=x.dtype)                               # (T, D)
    return out.reshape(B, N, D)


# -------------------------------------------------------------------------------------
# pure-JAX f32 reference (torch-layout params, exact erf GELU) for a correctness self-check
# -------------------------------------------------------------------------------------
def reference_forward(params, x, expert_mask, expert_probs, *, num_experts, num_heads, alpha):
    B, N, D = x.shape
    T = B * N
    H = num_heads
    hd = D // H
    hidden = params["fc1_w"].shape[0]

    def ln(z, g, b):
        mu = jnp.mean(z, axis=-1, keepdims=True)
        var = jnp.mean((z - mu) ** 2, axis=-1, keepdims=True)
        return (z - mu) / jnp.sqrt(var + LN_EPS) * g + b

    def nlin(z, w, b, in_lim, out_lim, gelu=False):
        Din = z.shape[-1]
        Dout = w.shape[0]
        zm = jnp.where(jnp.arange(Din)[None, :] < in_lim[:, None], z, 0.0)
        y = zm @ w.T + b[None, :]
        y = jnp.where(jnp.arange(Dout)[None, :] < out_lim[:, None], y, 0.0)
        if gelu:
            y = jax.nn.gelu(y, approximate=False)
        return y

    x2 = x.reshape(T, D)
    em = expert_mask.reshape(T).astype(jnp.int32)
    dim_lim = (D // (2 ** (num_experts - 1 - em))).astype(jnp.int32)
    full_d = jnp.full((T,), D, jnp.int32)
    full_3d = jnp.full((T,), 3 * D, jnp.int32)
    full_h = jnp.full((T,), hidden, jnp.int32)

    h1 = ln(x2, params["ln1_g"], params["ln1_b"])
    qkv = nlin(h1, params["qkv_w"], params["qkv_b"], dim_lim, full_3d)
    qkv = qkv.reshape(B, N, 3, H, hd).transpose(2, 0, 3, 1, 4)
    q, k, v = qkv[0], qkv[1], qkv[2]
    s = jnp.einsum("bhqd,bhkd->bhqk", q, k) * (hd ** -0.5)
    p = jax.nn.softmax(s, axis=-1)
    a = jnp.einsum("bhqk,bhkd->bhqd", p, v)
    a = a.transpose(0, 2, 1, 3).reshape(T, D)
    a = nlin(a, params["proj_w"], params["proj_b"], full_d, dim_lim)
    x_attn = x2 + a

    h2 = ln(x_attn, params["ln2_g"], params["ln2_b"])
    hmid = nlin(h2, params["fc1_w"], params["fc1_b"], dim_lim, full_h, gelu=True)
    x_mlp = nlin(hmid, params["fc2_w"], params["fc2_b"], full_h, dim_lim)

    scale = alpha * expert_probs.reshape(T, 1) + 1.0
    return (x_attn + scale * x_mlp).reshape(B, N, D)


# -------------------------------------------------------------------------------------
if __name__ == "__main__":
    B, N, D = 2, 16, 32
    H, E = 4, 4
    mlp_ratio = 4.0
    hidden = int(D * mlp_ratio)
    alpha = 1.0

    key = jax.random.PRNGKey(0)
    ks = jax.random.split(key, 10)
    torch_params = {
        "ln1_g": jnp.ones((D,), jnp.float32),          # nn.LayerNorm default init
        "ln1_b": jnp.zeros((D,), jnp.float32),
        "qkv_w": 0.02 * jax.random.normal(ks[0], (3 * D, D), jnp.float32),
        "qkv_b": jnp.zeros((3 * D,), jnp.float32),     # qkv_bias=False
        "proj_w": 0.02 * jax.random.normal(ks[1], (D, D), jnp.float32),
        "proj_b": 0.02 * jax.random.normal(ks[2], (D,), jnp.float32),
        "ln2_g": jnp.ones((D,), jnp.float32),
        "ln2_b": jnp.zeros((D,), jnp.float32),
        "fc1_w": 0.02 * jax.random.normal(ks[3], (hidden, D), jnp.float32),
        "fc1_b": 0.02 * jax.random.normal(ks[4], (hidden,), jnp.float32),
        "fc2_w": 0.02 * jax.random.normal(ks[5], (D, hidden), jnp.float32),
        "fc2_b": 0.02 * jax.random.normal(ks[6], (D,), jnp.float32),
    }

    x = jax.random.normal(ks[7], (B, N, D), jnp.float32)
    expert_mask = jax.random.randint(ks[8], (B, N), 0, E, jnp.int32)     # expert id per token
    expert_probs = jax.random.uniform(ks[9], (B, N, 1), jnp.float32)     # router prob per token

    params = prepare_params(torch_params)   # one-time: (Din, Dout) layout, bf16 matmul weights

    fwd = jax.jit(functools.partial(nested_experts_block_forward,
                                    num_experts=E, num_heads=H, alpha=alpha))
    out = jax.block_until_ready(fwd(params, x, expert_mask, expert_probs))

    ref = reference_forward(torch_params, x, expert_mask, expert_probs,
                            num_experts=E, num_heads=H, alpha=alpha)

    assert out.shape == (B, N, D)
    assert bool(jnp.all(jnp.isfinite(out)))
    assert bool(jnp.allclose(out, ref, atol=2e-2, rtol=2e-2))
    print("KERNEL_OK")
</pallas_src>

<mosaic_0001>
module attributes {stable_mosaic.version = 11 : i64} {
  func.func @_attention_kernel(%arg0: i32, %arg1: memref<1x16x96xbf16, #tpu.memory_space<vmem>>, %arg2: memref<1x16x32xbf16, #tpu.memory_space<vmem>>) attributes {dimension_semantics = [#tpu.dimension_semantics<parallel>], iteration_bounds = array<i64: 2>, scalar_prefetch = 0 : i64, scratch_operands = 0 : i64, tpu.core_type = #tpu.core_type<tc>, window_params = [{transform_indices = @transform_0, window_bounds = array<i64: 1, 16, 96>}, {transform_indices = @transform_1, window_bounds = array<i64: 1, 16, 32>}]} {
    %c0 = arith.constant 0 : index
    %c0_0 = arith.constant 0 : index
    %c0_1 = arith.constant 0 : index
    %0 = vector.load %arg1[%c0, %c0_0, %c0_1] : memref<1x16x96xbf16, #tpu.memory_space<vmem>>, vector<1x16x96xbf16>
    %1 = vector.shape_cast %0 : vector<1x16x96xbf16> to vector<16x96xbf16>
    %2 = vector.extract_strided_slice %1 {offsets = [0, 0], sizes = [16, 8], strides = [1, 1]} : vector<16x96xbf16> to vector<16x8xbf16>
    %cst = arith.constant 3.535160e-01 : bf16
    %3 = vector.broadcast %cst : bf16 to vector<16x8xbf16>
    %4 = arith.mulf %2, %3 : vector<16x8xbf16>
    %5 = vector.extract_strided_slice %1 {offsets = [0, 32], sizes = [16, 8], strides = [1, 1]} : vector<16x96xbf16> to vector<16x8xbf16>
    %6 = vector.extract_strided_slice %1 {offsets = [0, 64], sizes = [16, 8], strides = [1, 1]} : vector<16x96xbf16> to vector<16x8xbf16>
    %cst_2 = arith.constant dense<0.000000e+00> : vector<16x16xf32>
    %7 = tpu.matmul %4, %5, %cst_2 {dimension_numbers = #tpu.dot_dimension_numbers<[1], [1], [0], [0], [0, 0, 1, 0], [], []>} : vector<16x8xbf16>, vector<16x8xbf16>, vector<16x16xf32> -> vector<16x16xf32>
    %cst_3 = arith.constant dense<0xFF800000> : vector<16xf32>
    %8 = vector.multi_reduction <maximumf>, %7, %cst_3 [1] : vector<16x16xf32> to vector<16xf32>
    %9 = vector.shape_cast %8 : vector<16xf32> to vector<16x1xf32>
    %10 = vector.broadcast %9 : vector<16x1xf32> to vector<16x16xf32>
    %11 = arith.subf %7, %10 : vector<16x16xf32>
    %12 = math.exp %11 : vector<16x16xf32>
    %cst_4 = arith.constant dense<0.000000e+00> : vector<16xf32>
    %13 = vector.multi_reduction <add>, %12, %cst_4 [1] : vector<16x16xf32> to vector<16xf32>
    %14 = vector.shape_cast %13 : vector<16xf32> to vector<16x1xf32>
    %15 = arith.truncf %12 : vector<16x16xf32> to vector<16x16xbf16>
    %cst_5 = arith.constant dense<0.000000e+00> : vector<16x8xf32>
    %16 = tpu.matmul %15, %6, %cst_5 {dimension_numbers = #tpu.dot_dimension_numbers<[1], [0], [0], [1], [0, 0, 1, 1], [], []>} : vector<16x16xbf16>, vector<16x8xbf16>, vector<16x8xf32> -> vector<16x8xf32>
    %17 = tpu.reciprocal %14 {approx = true} : vector<16x1xf32> -> vector<16x1xf32>
    %18 = vector.broadcast %17 : vector<16x1xf32> to vector<16x8xf32>
    %19 = arith.mulf %16, %18 : vector<16x8xf32>
    %20 = arith.truncf %19 : vector<16x8xf32> to vector<16x8xbf16>
    %c0_6 = arith.constant 0 : index
    %c0_7 = arith.constant 0 : index
    %c0_8 = arith.constant 0 : index
    %21 = vector.load %arg2[%c0_6, %c0_7, %c0_8] : memref<1x16x32xbf16, #tpu.memory_space<vmem>>, vector<1x16x8xbf16>
    %22 = vector.shape_cast %21 : vector<1x16x8xbf16> to vector<16x8xbf16>
    %23 = vector.shape_cast %20 : vector<16x8xbf16> to vector<1x16x8xbf16>
    tpu.vector_store %arg2[%c0_6, %c0_7, %c0_8], %23 {strides = array<i32>} : memref<1x16x32xbf16, #tpu.memory_space<vmem>>, vector<1x16x8xbf16>,
    %24 = vector.extract_strided_slice %1 {offsets = [0, 8], sizes = [16, 8], strides = [1, 1]} : vector<16x96xbf16> to vector<16x8xbf16>
    %cst_9 = arith.constant 3.535160e-01 : bf16
    %25 = vector.broadcast %cst_9 : bf16 to vector<16x8xbf16>
    %26 = arith.mulf %24, %25 : vector<16x8xbf16>
    %27 = vector.extract_strided_slice %1 {offsets = [0, 40], sizes = [16, 8], strides = [1, 1]} : vector<16x96xbf16> to vector<16x8xbf16>
    %28 = vector.extract_strided_slice %1 {offsets = [0, 72], sizes = [16, 8], strides = [1, 1]} : vector<16x96xbf16> to vector<16x8xbf16>
    %cst_10 = arith.constant dense<0.000000e+00> : vector<16x16xf32>
    %29 = tpu.matmul %26, %27, %cst_10 {dimension_numbers = #tpu.dot_dimension_numbers<[1], [1], [0], [0], [0, 0, 1, 0], [], []>} : vector<16x8xbf16>, vector<16x8xbf16>, vector<16x16xf32> -> vector<16x16xf32>
    %cst_11 = arith.constant dense<0xFF800000> : vector<16xf32>
    %30 = vector.multi_reduction <maximumf>, %29, %cst_11 [1] : vector<16x16xf32> to vector<16xf32>
    %31 = vector.shape_cast %30 : vector<16xf32> to vector<16x1xf32>
    %32 = vector.broadcast %31 : vector<16x1xf32> to vector<16x16xf32>
    %33 = arith.subf %29, %32 : vector<16x16xf32>
    %34 = math.exp %33 : vector<16x16xf32>
    %cst_12 = arith.constant dense<0.000000e+00> : vector<16xf32>
    %35 = vector.multi_reduction <add>, %34, %cst_12 [1] : vector<16x16xf32> to vector<16xf32>
    %36 = vector.shape_cast %35 : vector<16xf32> to vector<16x1xf32>
    %37 = arith.truncf %34 : vector<16x16xf32> to vector<16x16xbf16>
    %cst_13 = arith.constant dense<0.000000e+00> : vector<16x8xf32>
    %38 = tpu.matmul %37, %28, %cst_13 {dimension_numbers = #tpu.dot_dimension_numbers<[1], [0], [0], [1], [0, 0, 1, 1], [], []>} : vector<16x16xbf16>, vector<16x8xbf16>, vector<16x8xf32> -> vector<16x8xf32>
    %39 = tpu.reciprocal %36 {approx = true} : vector<16x1xf32> -> vector<16x1xf32>
    %40 = vector.broadcast %39 : vector<16x1xf32> to vector<16x8xf32>
    %41 = arith.mulf %38, %40 : vector<16x8xf32>
    %42 = arith.truncf %41 : vector<16x8xf32> to vector<16x8xbf16>
    %c0_14 = arith.constant 0 : index
    %c0_15 = arith.constant 0 : index
    %c8 = arith.constant 8 : index
    %43 = vector.load %arg2[%c0_14, %c0_15, %c8] : memref<1x16x32xbf16, #tpu.memory_space<vmem>>, vector<1x16x8xbf16>
    %44 = vector.shape_cast %43 : vector<1x16x8xbf16> to vector<16x8xbf16>
    %45 = vector.shape_cast %42 : vector<16x8xbf16> to vector<1x16x8xbf16>
    tpu.vector_store %arg2[%c0_14, %c0_15, %c8], %45 {strides = array<i32>} : memref<1x16x32xbf16, #tpu.memory_space<vmem>>, vector<1x16x8xbf16>,
    %46 = vector.extract_strided_slice %1 {offsets = [0, 16], sizes = [16, 8], strides = [1, 1]} : vector<16x96xbf16> to vector<16x8xbf16>
    %cst_16 = arith.constant 3.535160e-01 : bf16
    %47 = vector.broadcast %cst_16 : bf16 to vector<16x8xbf16>
    %48 = arith.mulf %46, %47 : vector<16x8xbf16>
    %49 = vector.extract_strided_slice %1 {offsets = [0, 48], sizes = [16, 8], strides = [1, 1]} : vector<16x96xbf16> to vector<16x8xbf16>
    %50 = vector.extract_strided_slice %1 {offsets = [0, 80], sizes = [16, 8], strides = [1, 1]} : vector<16x96xbf16> to vector<16x8xbf16>
    %cst_17 = arith.constant dense<0.000000e+00> : vector<16x16xf32>
    %51 = tpu.matmul %48, %49, %cst_17 {dimension_numbers = #tpu.dot_dimension_numbers<[1], [1], [0], [0], [0, 0, 1, 0], [], []>} : vector<16x8xbf16>, vector<16x8xbf16>, vector<16x16xf32> -> vector<16x16xf32>
    %cst_18 = arith.constant dense<0xFF800000> : vector<16xf32>
    %52 = vector.multi_reduction <maximumf>, %51, %cst_18 [1] : vector<16x16xf32> to vector<16xf32>
    %53 = vector.shape_cast %52 : vector<16xf32> to vector<16x1xf32>
    %54 = vector.broadcast %53 : vector<16x1xf32> to vector<16x16xf32>
    %55 = arith.subf %51, %54 : vector<16x16xf32>
    %56 = math.exp %55 : vector<16x16xf32>
    %cst_19 = arith.constant dense<0.000000e+00> : vector<16xf32>
    %57 = vector.multi_reduction <add>, %56, %cst_19 [1] : vector<16x16xf32> to vector<16xf32>
    %58 = vector.shape_cast %57 : vector<16xf32> to vector<16x1xf32>
    %59 = arith.truncf %56 : vector<16x16xf32> to vector<16x16xbf16>
    %cst_20 = arith.constant dense<0.000000e+00> : vector<16x8xf32>
    %60 = tpu.matmul %59, %50, %cst_20 {dimension_numbers = #tpu.dot_dimension_numbers<[1], [0], [0], [1], [0, 0, 1, 1], [], []>} : vector<16x16xbf16>, vector<16x8xbf16>, vector<16x8xf32> -> vector<16x8xf32>
    %61 = tpu.reciprocal %58 {approx = true} : vector<16x1xf32> -> vector<16x1xf32>
    %62 = vector.broadcast %61 : vector<16x1xf32> to vector<16x8xf32>
    %63 = arith.mulf %60, %62 : vector<16x8xf32>
    %64 = arith.truncf %63 : vector<16x8xf32> to vector<16x8xbf16>
    %c0_21 = arith.constant 0 : index
    %c0_22 = arith.constant 0 : index
    %c16 = arith.constant 16 : index
    %65 = vector.load %arg2[%c0_21, %c0_22, %c16] : memref<1x16x32xbf16, #tpu.memory_space<vmem>>, vector<1x16x8xbf16>
    %66 = vector.shape_cast %65 : vector<1x16x8xbf16> to vector<16x8xbf16>
    %67 = vector.shape_cast %64 : vector<16x8xbf16> to vector<1x16x8xbf16>
    tpu.vector_store %arg2[%c0_21, %c0_22, %c16], %67 {strides = array<i32>} : memref<1x16x32xbf16, #tpu.memory_space<vmem>>, vector<1x16x8xbf16>,
    %68 = vector.extract_strided_slice %1 {offsets = [0, 24], sizes = [16, 8], strides = [1, 1]} : vector<16x96xbf16> to vector<16x8xbf16>
    %cst_23 = arith.constant 3.535160e-01 : bf16
    %69 = vector.broadcast %cst_23 : bf16 to vector<16x8xbf16>
    %70 = arith.mulf %68, %69 : vector<16x8xbf16>
    %71 = vector.extract_strided_slice %1 {offsets = [0, 56], sizes = [16, 8], strides = [1, 1]} : vector<16x96xbf16> to vector<16x8xbf16>
    %72 = vector.extract_strided_slice %1 {offsets = [0, 88], sizes = [16, 8], strides = [1, 1]} : vector<16x96xbf16> to vector<16x8xbf16>
    %cst_24 = arith.constant dense<0.000000e+00> : vector<16x16xf32>
    %73 = tpu.matmul %70, %71, %cst_24 {dimension_numbers = #tpu.dot_dimension_numbers<[1], [1], [0], [0], [0, 0, 1, 0], [], []>} : vector<16x8xbf16>, vector<16x8xbf16>, vector<16x16xf32> -> vector<16x16xf32>
    %cst_25 = arith.constant dense<0xFF800000> : vector<16xf32>
    %74 = vector.multi_reduction <maximumf>, %73, %cst_25 [1] : vector<16x16xf32> to vector<16xf32>
    %75 = vector.shape_cast %74 : vector<16xf32> to vector<16x1xf32>
    %76 = vector.broadcast %75 : vector<16x1xf32> to vector<16x16xf32>
    %77 = arith.subf %73, %76 : vector<16x16xf32>
    %78 = math.exp %77 : vector<16x16xf32>
    %cst_26 = arith.constant dense<0.000000e+00> : vector<16xf32>
    %79 = vector.multi_reduction <add>, %78, %cst_26 [1] : vector<16x16xf32> to vector<16xf32>
    %80 = vector.shape_cast %79 : vector<16xf32> to vector<16x1xf32>
    %81 = arith.truncf %78 : vector<16x16xf32> to vector<16x16xbf16>
    %cst_27 = arith.constant dense<0.000000e+00> : vector<16x8xf32>
    %82 = tpu.matmul %81, %72, %cst_27 {dimension_numbers = #tpu.dot_dimension_numbers<[1], [0], [0], [1], [0, 0, 1, 1], [], []>} : vector<16x16xbf16>, vector<16x8xbf16>, vector<16x8xf32> -> vector<16x8xf32>
    %83 = tpu.reciprocal %80 {approx = true} : vector<16x1xf32> -> vector<16x1xf32>
    %84 = vector.broadcast %83 : vector<16x1xf32> to vector<16x8xf32>
    %85 = arith.mulf %82, %84 : vector<16x8xf32>
    %86 = arith.truncf %85 : vector<16x8xf32> to vector<16x8xbf16>
    %c0_28 = arith.constant 0 : index
    %c0_29 = arith.constant 0 : index
    %c24 = arith.constant 24 : index
    %87 = vector.load %arg2[%c0_28, %c0_29, %c24] : memref<1x16x32xbf16, #tpu.memory_space<vmem>>, vector<1x16x8xbf16>
    %88 = vector.shape_cast %87 : vector<1x16x8xbf16> to vector<16x8xbf16>
    %89 = vector.shape_cast %86 : vector<16x8xbf16> to vector<1x16x8xbf16>
    tpu.vector_store %arg2[%c0_28, %c0_29, %c24], %89 {strides = array<i32>} : memref<1x16x32xbf16, #tpu.memory_space<vmem>>, vector<1x16x8xbf16>,
    return
  }
  func.func @transform_0(%arg0: i32) -> (i32, i32, i32) {
    %c0_i32 = arith.constant 0 : i32
    %c0_i32_0 = arith.constant 0 : i32
    %c0_i32_1 = arith.constant 0 : i32
    return %arg0, %c0_i32, %c0_i32_0 : i32, i32, i32
  }
  func.func @transform_1(%arg0: i32) -> (i32, i32, i32) {
    %c0_i32 = arith.constant 0 : i32
    %c0_i32_0 = arith.constant 0 : i32
    %c0_i32_1 = arith.constant 0 : i32
    return %arg0, %c0_i32, %c0_i32_0 : i32, i32, i32
  }
}

module attributes {stable_mosaic.version = 11 : i64} {
  func.func @_ln_expand_kernel(%arg0: i32, %arg1: i32, %arg2: memref<32x32xf32, #tpu.memory_space<vmem>>, %arg3: memref<1x32xf32, #tpu.memory_space<vmem>>, %arg4: memref<1x32xf32, #tpu.memory_space<vmem>>, %arg5: memref<32x96xbf16, #tpu.memory_space<vmem>>, %arg6: memref<1x96xf32, #tpu.memory_space<vmem>>, %arg7: memref<32x1xi32, #tpu.memory_space<vmem>>, %arg8: memref<32x96xbf16, #tpu.memory_space<vmem>>, %arg9: memref<32x32xbf16, #tpu.memory_space<vmem>>) attributes {dimension_semantics = [#tpu.dimension_semantics<parallel>, #tpu.dimension_semantics<arbitrary>], iteration_bounds = array<i64: 1, 1>, scalar_prefetch = 0 : i64, scratch_operands = 1 : i64, tpu.core_type = #tpu.core_type<tc>, window_params = [{transform_indices = @transform_0, window_bounds = array<i64: 32, 32>}, {pipeline_mode = #tpu.pipeline_mode<synchronous>, transform_indices = @transform_1, window_bounds = array<i64: 1, 32>}, {pipeline_mode = #tpu.pipeline_mode<synchronous>, transform_indices = @transform_2, window_bounds = array<i64: 1, 32>}, {pipeline_mode = #tpu.pipeline_mode<synchronous>, transform_indices = @transform_3, window_bounds = array<i64: 32, 96>}, {pipeline_mode = #tpu.pipeline_mode<synchronous>, transform_indices = @transform_4, window_bounds = array<i64: 1, 96>}, {transform_indices = @transform_5, window_bounds = array<i64: 32, 1>}, {transform_indices = @transform_6, window_bounds = array<i64: 32, 96>}]} {
    %c0_i32 = arith.constant 0 : i32
    %0 = arith.cmpi eq, %arg1, %c0_i32 : i32
    %1 = arith.extui %0 : i1 to i32
    %c0_i32_0 = arith.constant 0 : i32
    %2 = arith.cmpi ne, %1, %c0_i32_0 : i32
    scf.if %2 {
      %c0_8 = arith.constant 0 : index
      %c0_9 = arith.constant 0 : index
      %11 = vector.load %arg2[%c0_8, %c0_9] : memref<32x32xf32, #tpu.memory_space<vmem>>, vector<32x32xf32>
      %cst_10 = arith.constant dense<0.000000e+00> : vector<32xf32>
      %12 = vector.multi_reduction <add>, %11, %cst_10 [1] : vector<32x32xf32> to vector<32xf32>
      %13 = vector.shape_cast %12 : vector<32xf32> to vector<32x1xf32>
      %cst_11 = arith.constant 3.200000e+01 : f32
      %14 = vector.broadcast %cst_11 : f32 to vector<32x1xf32>
      %15 = arith.divf %13, %14 : vector<32x1xf32>
      %16 = vector.broadcast %15 : vector<32x1xf32> to vector<32x32xf32>
      %17 = arith.subf %11, %16 : vector<32x32xf32>
      %18 = arith.mulf %17, %17 : vector<32x32xf32>
      %cst_12 = arith.constant dense<0.000000e+00> : vector<32xf32>
      %19 = vector.multi_reduction <add>, %18, %cst_12 [1] : vector<32x32xf32> to vector<32xf32>
      %20 = vector.shape_cast %19 : vector<32xf32> to vector<32x1xf32>
      %cst_13 = arith.constant 3.200000e+01 : f32
      %21 = vector.broadcast %cst_13 : f32 to vector<32x1xf32>
      %22 = arith.divf %20, %21 : vector<32x1xf32>
      %cst_14 = arith.constant 9.99999974E-6 : f32
      %23 = vector.broadcast %cst_14 : f32 to vector<32x1xf32>
      %24 = arith.addf %22, %23 : vector<32x1xf32>
      %25 = math.rsqrt %24 : vector<32x1xf32>
      %26 = vector.broadcast %25 : vector<32x1xf32> to vector<32x32xf32>
      %27 = arith.mulf %17, %26 : vector<32x32xf32>
      %c0_15 = arith.constant 0 : index
      %c0_16 = arith.constant 0 : index
      %28 = vector.load %arg3[%c0_15, %c0_16] : memref<1x32xf32, #tpu.memory_space<vmem>>, vector<1x32xf32>
      %29 = vector.broadcast %28 : vector<1x32xf32> to vector<32x32xf32>
      %30 = arith.mulf %27, %29 : vector<32x32xf32>
      %c0_17 = arith.constant 0 : index
      %c0_18 = arith.constant 0 : index
      %31 = vector.load %arg4[%c0_17, %c0_18] : memref<1x32xf32, #tpu.memory_space<vmem>>, vector<1x32xf32>
      %32 = vector.broadcast %31 : vector<1x32xf32> to vector<32x32xf32>
      %33 = arith.addf %30, %32 : vector<32x32xf32>
      %34 = arith.truncf %33 : vector<32x32xf32> to vector<32x32xbf16>
      %35 = tpu.iota {dimensions = array<i32: 1>} : vector<32x32xi32>
      %c0_19 = arith.constant 0 : index
      %c0_20 = arith.constant 0 : index
      %36 = vector.load %arg7[%c0_19, %c0_20] : memref<32x1xi32, #tpu.memory_space<vmem>>, vector<32x1xi32>
      %37 = vector.broadcast %36 : vector<32x1xi32> to vector<32x32xi32>
      %38 = arith.cmpi slt, %35, %37 : vector<32x32xi32>
      %cst_21 = arith.constant 0.000000e+00 : bf16
      %39 = vector.broadcast %cst_21 : bf16 to vector<32x32xbf16>
      %40 = arith.select %38, %34, %39 : vector<32x32xi1>, vector<32x32xbf16>
      %c0_22 = arith.constant 0 : index
      %c0_23 = arith.constant 0 : index
      %41 = vector.load %arg9[%c0_22, %c0_23] : memref<32x32xbf16, #tpu.memory_space<vmem>>, vector<32x32xbf16>
      tpu.vector_store %arg9[%c0_22, %c0_23], %40 {strides = array<i32>} : memref<32x32xbf16, #tpu.memory_space<vmem>>, vector<32x32xbf16>,
    } else {
    }
    %c0 = arith.constant 0 : index
    %c0_1 = arith.constant 0 : index
    %3 = vector.load %arg9[%c0, %c0_1] : memref<32x32xbf16, #tpu.memory_space<vmem>>, vector<32x32xbf16>
    %c0_2 = arith.constant 0 : index
    %c0_3 = arith.constant 0 : index
    %4 = vector.load %arg5[%c0_2, %c0_3] : memref<32x96xbf16, #tpu.memory_space<vmem>>, vector<32x96xbf16>
    %cst = arith.constant dense<0.000000e+00> : vector<32x96xf32>
    %5 = tpu.matmul %3, %4, %cst {dimension_numbers = #tpu.dot_dimension_numbers<[1], [0], [0], [1], [0, 0, 1, 1], [], []>} : vector<32x32xbf16>, vector<32x96xbf16>, vector<32x96xf32> -> vector<32x96xf32>
    %c0_4 = arith.constant 0 : index
    %c0_5 = arith.constant 0 : index
    %6 = vector.load %arg6[%c0_4, %c0_5] : memref<1x96xf32, #tpu.memory_space<vmem>>, vector<1x96xf32>
    %7 = vector.broadcast %6 : vector<1x96xf32> to vector<32x96xf32>
    %8 = arith.addf %5, %7 : vector<32x96xf32>
    %9 = arith.truncf %8 : vector<32x96xf32> to vector<32x96xbf16>
    %c0_6 = arith.constant 0 : index
    %c0_7 = arith.constant 0 : index
    %10 = vector.load %arg8[%c0_6, %c0_7] : memref<32x96xbf16, #tpu.memory_space<vmem>>, vector<32x96xbf16>
    tpu.vector_store %arg8[%c0_6, %c0_7], %9 {strides = array<i32>} : memref<32x96xbf16, #tpu.memory_space<vmem>>, vector<32x96xbf16>,
    return
  }
  func.func @transform_0(%arg0: i32, %arg1: i32) -> (i32, i32) {
    %c0_i32 = arith.constant 0 : i32
    %c0_i32_0 = arith.constant 0 : i32
    return %arg0, %c0_i32 : i32, i32
  }
  func.func @transform_1(%arg0: i32, %arg1: i32) -> (i32, i32) {
    %c0_i32 = arith.constant 0 : i32
    %c0_i32_0 = arith.constant 0 : i32
    %c0_i32_1 = arith.constant 0 : i32
    return %c0_i32, %c0_i32_0 : i32, i32
  }
  func.func @transform_2(%arg0: i32, %arg1: i32) -> (i32, i32) {
    %c0_i32 = arith.constant 0 : i32
    %c0_i32_0 = arith.constant 0 : i32
    %c0_i32_1 = arith.constant 0 : i32
    return %c0_i32, %c0_i32_0 : i32, i32
  }
  func.func @transform_3(%arg0: i32, %arg1: i32) -> (i32, i32) {
    %c0_i32 = arith.constant 0 : i32
    %c0_i32_0 = arith.constant 0 : i32
    return %c0_i32, %arg1 : i32, i32
  }
  func.func @transform_4(%arg0: i32, %arg1: i32) -> (i32, i32) {
    %c0_i32 = arith.constant 0 : i32
    %c0_i32_0 = arith.constant 0 : i32
    return %c0_i32, %arg1 : i32, i32
  }
  func.func @transform_5(%arg0: i32, %arg1: i32) -> (i32, i32) {
    %c0_i32 = arith.constant 0 : i32
    %c0_i32_0 = arith.constant 0 : i32
    return %arg0, %c0_i32 : i32, i32
  }
  func.func @transform_6(%arg0: i32, %arg1: i32) -> (i32, i32) {
    %c0_i32 = arith.constant 0 : i32
    return %arg0, %arg1 : i32, i32
  }
}

module attributes {stable_mosaic.version = 11 : i64} {
  func.func @_contract_residual_kernel(%arg0: i32, %arg1: i32, %arg2: memref<32x32xbf16, #tpu.memory_space<vmem>>, %arg3: memref<32x32xbf16, #tpu.memory_space<vmem>>, %arg4: memref<1x32xf32, #tpu.memory_space<vmem>>, %arg5: memref<32x1xi32, #tpu.memory_space<vmem>>, %arg6: memref<32x32xf32, #tpu.memory_space<vmem>>, %arg7: memref<32x32xf32, #tpu.memory_space<vmem>>) attributes {dimension_semantics = [#tpu.dimension_semantics<parallel>, #tpu.dimension_semantics<arbitrary>], iteration_bounds = array<i64: 1, 1>, scalar_prefetch = 0 : i64, scratch_operands = 0 : i64, tpu.core_type = #tpu.core_type<tc>, window_params = [{transform_indices = @transform_0, window_bounds = array<i64: 32, 32>}, {pipeline_mode = #tpu.pipeline_mode<synchronous>, transform_indices = @transform_1, window_bounds = array<i64: 32, 32>}, {pipeline_mode = #tpu.pipeline_mode<synchronous>, transform_indices = @transform_2, window_bounds = array<i64: 1, 32>}, {transform_indices = @transform_3, window_bounds = array<i64: 32, 1>}, {transform_indices = @transform_4, window_bounds = array<i64: 32, 32>}, {transform_indices = @transform_5, window_bounds = array<i64: 32, 32>}]} {
    %c0 = arith.constant 0 : index
    %c0_0 = arith.constant 0 : index
    %0 = vector.load %arg2[%c0, %c0_0] : memref<32x32xbf16, #tpu.memory_space<vmem>>, vector<32x32xbf16>
    %c0_1 = arith.constant 0 : index
    %c0_2 = arith.constant 0 : index
    %1 = vector.load %arg3[%c0_1, %c0_2] : memref<32x32xbf16, #tpu.memory_space<vmem>>, vector<32x32xbf16>
    %cst = arith.constant dense<0.000000e+00> : vector<32x32xf32>
    %2 = tpu.matmul %0, %1, %cst {dimension_numbers = #tpu.dot_dimension_numbers<[1], [0], [0], [1], [0, 0, 1, 1], [], []>} : vector<32x32xbf16>, vector<32x32xbf16>, vector<32x32xf32> -> vector<32x32xf32>
    %c0_3 = arith.constant 0 : index
    %c0_4 = arith.constant 0 : index
    %3 = vector.load %arg4[%c0_3, %c0_4] : memref<1x32xf32, #tpu.memory_space<vmem>>, vector<1x32xf32>
    %4 = vector.broadcast %3 : vector<1x32xf32> to vector<32x32xf32>
    %5 = arith.addf %2, %4 : vector<32x32xf32>
    %c32_i32 = arith.constant 32 : i32
    %6 = arith.muli %arg1, %c32_i32 : i32
    %7 = tpu.iota {dimensions = array<i32: 1>} : vector<32x32xi32>
    %8 = vector.broadcast %6 : i32 to vector<32x32xi32>
    %9 = arith.addi %8, %7 : vector<32x32xi32>
    %c0_5 = arith.constant 0 : index
    %c0_6 = arith.constant 0 : index
    %10 = vector.load %arg5[%c0_5, %c0_6] : memref<32x1xi32, #tpu.memory_space<vmem>>, vector<32x1xi32>
    %11 = vector.broadcast %10 : vector<32x1xi32> to vector<32x32xi32>
    %12 = arith.cmpi slt, %9, %11 : vector<32x32xi32>
    %cst_7 = arith.constant 1.000000e+00 : f32
    %cst_8 = arith.constant 0.000000e+00 : f32
    %13 = vector.broadcast %cst_7 : f32 to vector<32x32xf32>
    %14 = vector.broadcast %cst_8 : f32 to vector<32x32xf32>
    %15 = arith.select %12, %13, %14 : vector<32x32xi1>, vector<32x32xf32>
    %c0_9 = arith.constant 0 : index
    %c0_10 = arith.constant 0 : index
    %16 = vector.load %arg6[%c0_9, %c0_10] : memref<32x32xf32, #tpu.memory_space<vmem>>, vector<32x32xf32>
    %17 = arith.mulf %5, %15 : vector<32x32xf32>
    %18 = arith.addf %16, %17 : vector<32x32xf32>
    %c0_11 = arith.constant 0 : index
    %c0_12 = arith.constant 0 : index
    %19 = vector.load %arg7[%c0_11, %c0_12] : memref<32x32xf32, #tpu.memory_space<vmem>>, vector<32x32xf32>
    tpu.vector_store %arg7[%c0_11, %c0_12], %18 {strides = array<i32>} : memref<32x32xf32, #tpu.memory_space<vmem>>, vector<32x32xf32>,
    return
  }
  func.func @transform_0(%arg0: i32, %arg1: i32) -> (i32, i32) {
    %c0_i32 = arith.constant 0 : i32
    %c0_i32_0 = arith.constant 0 : i32
    return %arg0, %c0_i32 : i32, i32
  }
  func.func @transform_1(%arg0: i32, %arg1: i32) -> (i32, i32) {
    %c0_i32 = arith.constant 0 : i32
    %c0_i32_0 = arith.constant 0 : i32
    return %c0_i32, %arg1 : i32, i32
  }
  func.func @transform_2(%arg0: i32, %arg1: i32) -> (i32, i32) {
    %c0_i32 = arith.constant 0 : i32
    %c0_i32_0 = arith.constant 0 : i32
    return %c0_i32, %arg1 : i32, i32
  }
  func.func @transform_3(%arg0: i32, %arg1: i32) -> (i32, i32) {
    %c0_i32 = arith.constant 0 : i32
    %c0_i32_0 = arith.constant 0 : i32
    return %arg0, %c0_i32 : i32, i32
  }
  func.func @transform_4(%arg0: i32, %arg1: i32) -> (i32, i32) {
    %c0_i32 = arith.constant 0 : i32
    return %arg0, %arg1 : i32, i32
  }
  func.func @transform_5(%arg0: i32, %arg1: i32) -> (i32, i32) {
    %c0_i32 = arith.constant 0 : i32
    return %arg0, %arg1 : i32, i32
  }
}

module attributes {stable_mosaic.version = 11 : i64} {
  func.func @_ln_expand_kernel(%arg0: i32, %arg1: i32, %arg2: memref<32x32xf32, #tpu.memory_space<vmem>>, %arg3: memref<1x32xf32, #tpu.memory_space<vmem>>, %arg4: memref<1x32xf32, #tpu.memory_space<vmem>>, %arg5: memref<32x128xbf16, #tpu.memory_space<vmem>>, %arg6: memref<1x128xf32, #tpu.memory_space<vmem>>, %arg7: memref<32x1xi32, #tpu.memory_space<vmem>>, %arg8: memref<32x128xbf16, #tpu.memory_space<vmem>>, %arg9: memref<32x32xbf16, #tpu.memory_space<vmem>>) attributes {dimension_semantics = [#tpu.dimension_semantics<parallel>, #tpu.dimension_semantics<arbitrary>], iteration_bounds = array<i64: 1, 1>, scalar_prefetch = 0 : i64, scratch_operands = 1 : i64, tpu.core_type = #tpu.core_type<tc>, window_params = [{transform_indices = @transform_0, window_bounds = array<i64: 32, 32>}, {pipeline_mode = #tpu.pipeline_mode<synchronous>, transform_indices = @transform_1, window_bounds = array<i64: 1, 32>}, {pipeline_mode = #tpu.pipeline_mode<synchronous>, transform_indices = @transform_2, window_bounds = array<i64: 1, 32>}, {pipeline_mode = #tpu.pipeline_mode<synchronous>, transform_indices = @transform_3, window_bounds = array<i64: 32, 128>}, {pipeline_mode = #tpu.pipeline_mode<synchronous>, transform_indices = @transform_4, window_bounds = array<i64: 1, 128>}, {transform_indices = @transform_5, window_bounds = array<i64: 32, 1>}, {transform_indices = @transform_6, window_bounds = array<i64: 32, 128>}]} {
    %c0_i32 = arith.constant 0 : i32
    %0 = arith.cmpi eq, %arg1, %c0_i32 : i32
    %1 = arith.extui %0 : i1 to i32
    %c0_i32_0 = arith.constant 0 : i32
    %2 = arith.cmpi ne, %1, %c0_i32_0 : i32
    scf.if %2 {
      %c0_12 = arith.constant 0 : index
      %c0_13 = arith.constant 0 : index
      %24 = vector.load %arg2[%c0_12, %c0_13] : memref<32x32xf32, #tpu.memory_space<vmem>>, vector<32x32xf32>
      %cst_14 = arith.constant dense<0.000000e+00> : vector<32xf32>
      %25 = vector.multi_reduction <add>, %24, %cst_14 [1] : vector<32x32xf32> to vector<32xf32>
      %26 = vector.shape_cast %25 : vector<32xf32> to vector<32x1xf32>
      %cst_15 = arith.constant 3.200000e+01 : f32
      %27 = vector.broadcast %cst_15 : f32 to vector<32x1xf32>
      %28 = arith.divf %26, %27 : vector<32x1xf32>
      %29 = vector.broadcast %28 : vector<32x1xf32> to vector<32x32xf32>
      %30 = arith.subf %24, %29 : vector<32x32xf32>
      %31 = arith.mulf %30, %30 : vector<32x32xf32>
      %cst_16 = arith.constant dense<0.000000e+00> : vector<32xf32>
      %32 = vector.multi_reduction <add>, %31, %cst_16 [1] : vector<32x32xf32> to vector<32xf32>
      %33 = vector.shape_cast %32 : vector<32xf32> to vector<32x1xf32>
      %cst_17 = arith.constant 3.200000e+01 : f32
      %34 = vector.broadcast %cst_17 : f32 to vector<32x1xf32>
      %35 = arith.divf %33, %34 : vector<32x1xf32>
      %cst_18 = arith.constant 9.99999974E-6 : f32
      %36 = vector.broadcast %cst_18 : f32 to vector<32x1xf32>
      %37 = arith.addf %35, %36 : vector<32x1xf32>
      %38 = math.rsqrt %37 : vector<32x1xf32>
      %39 = vector.broadcast %38 : vector<32x1xf32> to vector<32x32xf32>
      %40 = arith.mulf %30, %39 : vector<32x32xf32>
      %c0_19 = arith.constant 0 : index
      %c0_20 = arith.constant 0 : index
      %41 = vector.load %arg3[%c0_19, %c0_20] : memref<1x32xf32, #tpu.memory_space<vmem>>, vector<1x32xf32>
      %42 = vector.broadcast %41 : vector<1x32xf32> to vector<32x32xf32>
      %43 = arith.mulf %40, %42 : vector<32x32xf32>
      %c0_21 = arith.constant 0 : index
      %c0_22 = arith.constant 0 : index
      %44 = vector.load %arg4[%c0_21, %c0_22] : memref<1x32xf32, #tpu.memory_space<vmem>>, vector<1x32xf32>
      %45 = vector.broadcast %44 : vector<1x32xf32> to vector<32x32xf32>
      %46 = arith.addf %43, %45 : vector<32x32xf32>
      %47 = arith.truncf %46 : vector<32x32xf32> to vector<32x32xbf16>
      %48 = tpu.iota {dimensions = array<i32: 1>} : vector<32x32xi32>
      %c0_23 = arith.constant 0 : index
      %c0_24 = arith.constant 0 : index
      %49 = vector.load %arg7[%c0_23, %c0_24] : memref<32x1xi32, #tpu.memory_space<vmem>>, vector<32x1xi32>
      %50 = vector.broadcast %49 : vector<32x1xi32> to vector<32x32xi32>
      %51 = arith.cmpi slt, %48, %50 : vector<32x32xi32>
      %cst_25 = arith.constant 0.000000e+00 : bf16
      %52 = vector.broadcast %cst_25 : bf16 to vector<32x32xbf16>
      %53 = arith.select %51, %47, %52 : vector<32x32xi1>, vector<32x32xbf16>
      %c0_26 = arith.constant 0 : index
      %c0_27 = arith.constant 0 : index
      %54 = vector.load %arg9[%c0_26, %c0_27] : memref<32x32xbf16, #tpu.memory_space<vmem>>, vector<32x32xbf16>
      tpu.vector_store %arg9[%c0_26, %c0_27], %53 {strides = array<i32>} : memref<32x32xbf16, #tpu.memory_space<vmem>>, vector<32x32xbf16>,
    } else {
    }
    %c0 = arith.constant 0 : index
    %c0_1 = arith.constant 0 : index
    %3 = vector.load %arg9[%c0, %c0_1] : memref<32x32xbf16, #tpu.memory_space<vmem>>, vector<32x32xbf16>
    %c0_2 = arith.constant 0 : index
    %c0_3 = arith.constant 0 : index
    %4 = vector.load %arg5[%c0_2, %c0_3] : memref<32x128xbf16, #tpu.memory_space<vmem>>, vector<32x128xbf16>
    %cst = arith.constant dense<0.000000e+00> : vector<32x128xf32>
    %5 = tpu.matmul %3, %4, %cst {dimension_numbers = #tpu.dot_dimension_numbers<[1], [0], [0], [1], [0, 0, 1, 1], [], []>} : vector<32x32xbf16>, vector<32x128xbf16>, vector<32x128xf32> -> vector<32x128xf32>
    %c0_4 = arith.constant 0 : index
    %c0_5 = arith.constant 0 : index
    %6 = vector.load %arg6[%c0_4, %c0_5] : memref<1x128xf32, #tpu.memory_space<vmem>>, vector<1x128xf32>
    %7 = vector.broadcast %6 : vector<1x128xf32> to vector<32x128xf32>
    %8 = arith.addf %5, %7 : vector<32x128xf32>
    %cst_6 = arith.constant 5.000000e-01 : f32
    %9 = vector.broadcast %cst_6 : f32 to vector<32x128xf32>
    %10 = arith.mulf %9, %8 : vector<32x128xf32>
    %11 = arith.mulf %8, %8 : vector<32x128xf32>
    %12 = arith.mulf %11, %8 : vector<32x128xf32>
    %cst_7 = arith.constant 4.471500e-02 : f32
    %13 = vector.broadcast %cst_7 : f32 to vector<32x128xf32>
    %14 = arith.mulf %13, %12 : vector<32x128xf32>
    %15 = arith.addf %8, %14 : vector<32x128xf32>
    %cst_8 = arith.constant 0.797884583 : f32
    %16 = vector.broadcast %cst_8 : f32 to vector<32x128xf32>
    %17 = arith.mulf %16, %15 : vector<32x128xf32>
    %18 = math.tanh %17 : vector<32x128xf32>
    %cst_9 = arith.constant 1.000000e+00 : f32
    %19 = vector.broadcast %cst_9 : f32 to vector<32x128xf32>
    %20 = arith.addf %19, %18 : vector<32x128xf32>
    %21 = arith.mulf %10, %20 : vector<32x128xf32>
    %22 = arith.truncf %21 : vector<32x128xf32> to vector<32x128xbf16>
    %c0_10 = arith.constant 0 : index
    %c0_11 = arith.constant 0 : index
    %23 = vector.load %arg8[%c0_10, %c0_11] : memref<32x128xbf16, #tpu.memory_space<vmem>>, vector<32x128xbf16>
    tpu.vector_store %arg8[%c0_10, %c0_11], %22 {strides = array<i32>} : memref<32x128xbf16, #tpu.memory_space<vmem>>, vector<32x128xbf16>,
    return
  }
  func.func @transform_0(%arg0: i32, %arg1: i32) -> (i32, i32) {
    %c0_i32 = arith.constant 0 : i32
    %c0_i32_0 = arith.constant 0 : i32
    return %arg0, %c0_i32 : i32, i32
  }
  func.func @transform_1(%arg0: i32, %arg1: i32) -> (i32, i32) {
    %c0_i32 = arith.constant 0 : i32
    %c0_i32_0 = arith.constant 0 : i32
    %c0_i32_1 = arith.constant 0 : i32
    return %c0_i32, %c0_i32_0 : i32, i32
  }
  func.func @transform_2(%arg0: i32, %arg1: i32) -> (i32, i32) {
    %c0_i32 = arith.constant 0 : i32
    %c0_i32_0 = arith.constant 0 : i32
    %c0_i32_1 = arith.constant 0 : i32
    return %c0_i32, %c0_i32_0 : i32, i32
  }
  func.func @transform_3(%arg0: i32, %arg1: i32) -> (i32, i32) {
    %c0_i32 = arith.constant 0 : i32
    %c0_i32_0 = arith.constant 0 : i32
    return %c0_i32, %arg1 : i32, i32
  }
  func.func @transform_4(%arg0: i32, %arg1: i32) -> (i32, i32) {
    %c0_i32 = arith.constant 0 : i32
    %c0_i32_0 = arith.constant 0 : i32
    return %c0_i32, %arg1 : i32, i32
  }
  func.func @transform_5(%arg0: i32, %arg1: i32) -> (i32, i32) {
    %c0_i32 = arith.constant 0 : i32
    %c0_i32_0 = arith.constant 0 : i32
    return %arg0, %c0_i32 : i32, i32
  }
  func.func @transform_6(%arg0: i32, %arg1: i32) -> (i32, i32) {
    %c0_i32 = arith.constant 0 : i32
    return %arg0, %arg1 : i32, i32
  }
}

module attributes {stable_mosaic.version = 11 : i64} {
  func.func @_contract_residual_kernel(%arg0: i32, %arg1: i32, %arg2: memref<32x128xbf16, #tpu.memory_space<vmem>>, %arg3: memref<128x32xbf16, #tpu.memory_space<vmem>>, %arg4: memref<1x32xf32, #tpu.memory_space<vmem>>, %arg5: memref<32x1xi32, #tpu.memory_space<vmem>>, %arg6: memref<32x32xf32, #tpu.memory_space<vmem>>, %arg7: memref<32x1xf32, #tpu.memory_space<vmem>>, %arg8: memref<32x32xf32, #tpu.memory_space<vmem>>) attributes {dimension_semantics = [#tpu.dimension_semantics<parallel>, #tpu.dimension_semantics<arbitrary>], iteration_bounds = array<i64: 1, 1>, scalar_prefetch = 0 : i64, scratch_operands = 0 : i64, tpu.core_type = #tpu.core_type<tc>, window_params = [{transform_indices = @transform_0, window_bounds = array<i64: 32, 128>}, {pipeline_mode = #tpu.pipeline_mode<synchronous>, transform_indices = @transform_1, window_bounds = array<i64: 128, 32>}, {pipeline_mode = #tpu.pipeline_mode<synchronous>, transform_indices = @transform_2, window_bounds = array<i64: 1, 32>}, {transform_indices = @transform_3, window_bounds = array<i64: 32, 1>}, {transform_indices = @transform_4, window_bounds = array<i64: 32, 32>}, {transform_indices = @transform_5, window_bounds = array<i64: 32, 1>}, {transform_indices = @transform_6, window_bounds = array<i64: 32, 32>}]} {
    %c0 = arith.constant 0 : index
    %c0_0 = arith.constant 0 : index
    %0 = vector.load %arg2[%c0, %c0_0] : memref<32x128xbf16, #tpu.memory_space<vmem>>, vector<32x128xbf16>
    %c0_1 = arith.constant 0 : index
    %c0_2 = arith.constant 0 : index
    %1 = vector.load %arg3[%c0_1, %c0_2] : memref<128x32xbf16, #tpu.memory_space<vmem>>, vector<128x32xbf16>
    %cst = arith.constant dense<0.000000e+00> : vector<32x32xf32>
    %2 = tpu.matmul %0, %1, %cst {dimension_numbers = #tpu.dot_dimension_numbers<[1], [0], [0], [1], [0, 0, 1, 1], [], []>} : vector<32x128xbf16>, vector<128x32xbf16>, vector<32x32xf32> -> vector<32x32xf32>
    %c0_3 = arith.constant 0 : index
    %c0_4 = arith.constant 0 : index
    %3 = vector.load %arg4[%c0_3, %c0_4] : memref<1x32xf32, #tpu.memory_space<vmem>>, vector<1x32xf32>
    %4 = vector.broadcast %3 : vector<1x32xf32> to vector<32x32xf32>
    %5 = arith.addf %2, %4 : vector<32x32xf32>
    %c32_i32 = arith.constant 32 : i32
    %6 = arith.muli %arg1, %c32_i32 : i32
    %7 = tpu.iota {dimensions = array<i32: 1>} : vector<32x32xi32>
    %8 = vector.broadcast %6 : i32 to vector<32x32xi32>
    %9 = arith.addi %8, %7 : vector<32x32xi32>
    %c0_5 = arith.constant 0 : index
    %c0_6 = arith.constant 0 : index
    %10 = vector.load %arg7[%c0_5, %c0_6] : memref<32x1xf32, #tpu.memory_space<vmem>>, vector<32x1xf32>
    %c0_7 = arith.constant 0 : index
    %c0_8 = arith.constant 0 : index
    %11 = vector.load %arg5[%c0_7, %c0_8] : memref<32x1xi32, #tpu.memory_space<vmem>>, vector<32x1xi32>
    %12 = vector.broadcast %11 : vector<32x1xi32> to vector<32x32xi32>
    %13 = arith.cmpi slt, %9, %12 : vector<32x32xi32>
    %cst_9 = arith.constant 0.000000e+00 : f32
    %14 = vector.shape_cast %10 : vector<32x1xf32> to vector<32x1xf32>
    %15 = vector.broadcast %14 : vector<32x1xf32> to vector<32x32xf32>
    %16 = vector.broadcast %cst_9 : f32 to vector<32x32xf32>
    %17 = arith.select %13, %15, %16 : vector<32x32xi1>, vector<32x32xf32>
    %c0_10 = arith.constant 0 : index
    %c0_11 = arith.constant 0 : index
    %18 = vector.load %arg6[%c0_10, %c0_11] : memref<32x32xf32, #tpu.memory_space<vmem>>, vector<32x32xf32>
    %19 = arith.mulf %5, %17 : vector<32x32xf32>
    %20 = arith.addf %18, %19 : vector<32x32xf32>
    %c0_12 = arith.constant 0 : index
    %c0_13 = arith.constant 0 : index
    %21 = vector.load %arg8[%c0_12, %c0_13] : memref<32x32xf32, #tpu.memory_space<vmem>>, vector<32x32xf32>
    tpu.vector_store %arg8[%c0_12, %c0_13], %20 {strides = array<i32>} : memref<32x32xf32, #tpu.memory_space<vmem>>, vector<32x32xf32>,
    return
  }
  func.func @transform_0(%arg0: i32, %arg1: i32) -> (i32, i32) {
    %c0_i32 = arith.constant 0 : i32
    %c0_i32_0 = arith.constant 0 : i32
    return %arg0, %c0_i32 : i32, i32
  }
  func.func @transform_1(%arg0: i32, %arg1: i32) -> (i32, i32) {
    %c0_i32 = arith.constant 0 : i32
    %c0_i32_0 = arith.constant 0 : i32
    return %c0_i32, %arg1 : i32, i32
  }
  func.func @transform_2(%arg0: i32, %arg1: i32) -> (i32, i32) {
    %c0_i32 = arith.constant 0 : i32
    %c0_i32_0 = arith.constant 0 : i32
    return %c0_i32, %arg1 : i32, i32
  }
  func.func @transform_3(%arg0: i32, %arg1: i32) -> (i32, i32) {
    %c0_i32 = arith.constant 0 : i32
    %c0_i32_0 = arith.constant 0 : i32
    return %arg0, %c0_i32 : i32, i32
  }
  func.func @transform_4(%arg0: i32, %arg1: i32) -> (i32, i32) {
    %c0_i32 = arith.constant 0 : i32
    return %arg0, %arg1 : i32, i32
  }
  func.func @transform_5(%arg0: i32, %arg1: i32) -> (i32, i32) {
    %c0_i32 = arith.constant 0 : i32
    %c0_i32_0 = arith.constant 0 : i32
    return %arg0, %c0_i32 : i32, i32
  }
  func.func @transform_6(%arg0: i32, %arg1: i32) -> (i32, i32) {
    %c0_i32 = arith.constant 0 : i32
    return %arg0, %arg1 : i32, i32
  }
}

</mosaic_0001>

<bundles_post_ra>
// kernel: nested_experts_block_forward.5
= control target key start
LH: loop header
LB: loop body
LE: loop exit
PB: predicated region body
PF: predicated region fallthrough
CT: control target
= control target key end

     0   :  { %vm32_vm0 = vcmask 261120   ;;  %v284_v8 = vmov 0   ;;  %v110_v45 = vlaneseq  ;;  %vm235_vm7 = vcmask 781312   ;;  %s388_s0 = inlined_call_operand.vmem [shape: f32[32,32], index: 0, kind: input, shape index: {}]   ;;  %s389_s5 = inlined_call_operand.vmem [shape: s32[32,1], index: 5, kind: input, shape index: {}]   ;;  %s390_s3 = inlined_call_operand.vmem [shape: bf16[32,96], index: 3, kind: input, shape index: {}]   ;;  %s391_s1 = inlined_call_operand.vmem [shape: f32[1,32], index: 1, kind: input, shape index: {}]   ;;  %s392_s2 = inlined_call_operand.vmem [shape: f32[1,32], index: 2, kind: input, shape index: {}]   ;;  %s393_s4 = inlined_call_operand.vmem [shape: f32[1,96], index: 4, kind: input, shape index: {}]   ;;  %s394_s6 = inlined_call_operand.vmem [shape: bf16[32,96], index: 6, kind: output, shape index: {}]  }
   0x1   :  { %v28_v0 = vld [vmem:[%s388_s0] sm:$0xff]  ;;  %v30_v1 = vld [vmem:[%s388_s0 + $0x10] sm:$0xff]  ;;  %v29_v2 = vld [vmem:[%s388_s0 + $0x8] sm:$0xff]  ;;  %273 = vset.pattern.permute.xlu1 %v284_v8  ;;  %272 = vset.pattern.permute.xlu0 %v284_v8 }
   0x2   :  { %v33_v3 = vsel %vm32_vm0, %v28_v0, 0.0  ;;  %v39_v4 = vsel %vm32_vm0, %v30_v1, 0.0  ;;  %v31_v5 = vld [vmem:[%s388_s0 + $0x18] sm:$0xff]  ;;  %v36_v6 = vsel %vm32_vm0, %v29_v2, 0.0  ;;  %v113_v24 = vld [vmem:[%s389_s5 + $0x8] sm:$0xff]  ;;  %v114_v25 = vld [vmem:[%s389_s5 + $0x10] sm:$0xff] }
   0x3   :  { %34 = vadd.xlane.f32.xlu0 %v33_v3  ;;  %40 = vadd.xlane.f32.xlu1 %v39_v4  ;;  %v42_v7 = vsel %vm32_vm0, %v31_v5, 0.0  ;;  %v112_v26 = vld [vmem:[%s389_s5] sm:$0xff]  ;;  %v115_v32 = vld [vmem:[%s389_s5 + $0x18] sm:$0xff]  ;;  %v275_v34 = vld [vmem:[%s390_s3 + $0x8] sm:$0xff]   ;;  %v111_v51 = vand.u32 127, %v110_v45 }
   0x4   :  { %v274_v33 = vld [vmem:[%s390_s3] sm:$0xff]  }
   0x5   :  { %263 = vmatprep.subr.bf16.mxu0 %v274_v33  ;;  %v244_v44 = vld [vmem:[%s391_s1] ss:$0 sm:$0xff] }
   0x6   :  { %264 = vmatpush3.bf16.msra.mxu0 %v274_v33  ;;  %v245_v49 = vld [vmem:[%s392_s2] ss:$0 sm:$0xff] }
   0x7   :  { %37 = vadd.xlane.f32.xlu0 %v36_v6  ;;  %43 = vadd.xlane.f32.xlu1 %v42_v7 }
   0x8   :  { %265 = vmatprep.subr.bf16.mxu0 %v275_v34 }
   0xa   :  { %266 = vmatpush3.bf16.msra.mxu0 %v275_v34 }
  0x90   :  { %v35_v9 = vpop.xlane.xlu0 %34  ;;  %v41_v10 = vpop.xlane.xlu1 %40 }
  0x91   :  { %v46_v11 = vmul.f32 0.03125, %v35_v9  ;;  %v48_v12 = vmul.f32 0.03125, %v41_v10 }
  0x93   :  { %v50_v13 = vsub.f32 %v28_v0, %v46_v11  ;;  %v336_v14 = vsub.f32 %v30_v1, %v48_v12 }
  0x94   :  { %v38_v15 = vpop.xlane.xlu0 %37  ;;  %v44_v27 = vpop.xlane.xlu1 %43 }
  0x95   :  { %v47_v16 = vmul.f32 0.03125, %v38_v15  ;;  %v54_v17 = vmul.f32 %v50_v13, %v50_v13  ;;  %v56_v18 = vmul.f32 %v336_v14, %v336_v14  ;;  %v49_v28 = vmul.f32 0.03125, %v44_v27 }
  0x97   :  { %v51_v19 = vsub.f32 %v29_v2, %v47_v16  ;;  %v58_v20 = vsel %vm32_vm0, %v54_v17, 0.0  ;;  %v64_v21 = vsel %vm32_vm0, %v56_v18, 0.0  ;;  %v53_v29 = vsub.f32 %v31_v5, %v49_v28 }
  0x98   :  { %59 = vadd.xlane.f32.xlu0 %v58_v20 }
  0x99   :  { %v55_v22 = vmul.f32 %v51_v19, %v51_v19  ;;  %v57_v30 = vmul.f32 %v53_v29, %v53_v29 }
  0x9b   :  { %v61_v23 = vsel %vm32_vm0, %v55_v22, 0.0  ;;  %v67_v31 = vsel %vm32_vm0, %v57_v30, 0.0 }
  0x9c   :  { %65 = vadd.xlane.f32.xlu0 %v64_v21  ;;  %62 = vadd.xlane.f32.xlu1 %v61_v23 }
  0xad   :  { %120 = vperm.xlu1 %273, %v113_v24  }
  0xb1   :  { %123 = vperm.xlu1 %273, %v114_v25  }
  0xb2   :  { %117 = vperm.xlu0 %272, %v112_v26  }
  0xd5   :  { %68 = vadd.xlane.f32.xlu1 %v67_v31 }
  0xe6   :  { %126 = vperm.xlu1 %273, %v115_v32  }
 0x125   :  { %v60_v35 = vpop.xlane.xlu0 %59 }
 0x126   :  { %v70_v36 = vmul.f32 0.03125, %v60_v35 }
 0x128   :  { %v74_v37 = vadd.f32 1e-05, %v70_v36 }
 0x129   :  { %v63_v38 = vpop.xlane.xlu1 %62  ;;  %v66_v43 = vpop.xlane.xlu0 %65 }
 0x12a   :  { %276 = vrsqrt.f32 %v74_v37  ;;  %v71_v39 = vmul.f32 0.03125, %v63_v38  ;;  %v72_v59 = vmul.f32 0.03125, %v66_v43 }
 0x12c   :  { %v75_v40 = vadd.f32 1e-05, %v71_v39  ;;  %v76_v60 = vadd.f32 1e-05, %v72_v59 }
 0x12d   :  { %v121_v53 = vpop.permute.xlu1 %120 }
 0x12e   :  { %278 = vrsqrt.f32 %v75_v40  ;;  %vm129_vm2 = vcmp.lt.s32.totalorder %v111_v51, %v121_v53 }
 0x12f   :  { %280 = vrsqrt.f32 %v76_v60 }
 0x131   :  { %v118_v50 = vpop.permute.xlu0 %117  ;;  %v124_v61 = vpop.permute.xlu1 %123 }
 0x132   :  { %vm128_vm1 = vcmp.lt.s32.totalorder %v111_v51, %v118_v50  ;;  %vm130_vm5 = vcmp.lt.s32.totalorder %v111_v51, %v124_v61 }
 0x133   :  { %vm132_vm3 = vmpackc.low %vm129_vm2, %vm128_vm1 }
 0x134   :  { %v277_v41 = vpop.eup %276 }
 0x135   :  { %v82_v42 = vmul.f32 %v277_v41, %v50_v13  ;;  %v246_v13 = vld [vmem:[%s393_s4] ss:$0 sm:$0xff] }
 0x137   :  { %v93_v48 = vmul.f32 %v244_v44, %v82_v42 }
 0x138   :  { %v279_v46 = vpop.eup %278 }
 0x139   :  { %v83_v47 = vmul.f32 %v279_v46, %v51_v19  ;;  %v104_v54 = vadd.f32 %v245_v49, %v93_v48  ;;  %v281_v1 = vpop.eup %280 }
 0x13a   :  { %v84_v2 = vmul.f32 %v281_v1, %v336_v14 }
 0x13b   :  { %v94_v52 = vmul.f32 %v244_v44, %v83_v47 }
 0x13c   :  { %v95_v5 = vmul.f32 %v244_v44, %v84_v2 }
 0x13d   :  { %v105_v55 = vadd.f32 %v245_v49, %v94_v52 }
 0x13e   :  { %v106_v9 = vadd.f32 %v245_v49, %v95_v5 }
 0x13f   :  { %v108_v56 = vpack.c.bf16 %v105_v55, %v104_v54 }
 0x141   :  { %v134_v57 = vsel %vm132_vm3, %v108_v56, 0 }
 0x142   :  { %136 = vst.msk [vmem:[#allocation2] sm:$0xff] %vm32_vm0, %v134_v57 }
 0x149   :  { %v138_v58 = vld [vmem:[#allocation2] sm:$0xff] }
 0x14a   :  { %267 = vmatprep.mubr.msk.bf16.mxu0 %vm32_vm0, %v138_v58 }
 0x162   :  { %v69_v62 = vpop.xlane.xlu1 %68 }
 0x163   :  { %v73_v63 = vmul.f32 0.03125, %v69_v62 }
 0x165   :  { %v77_v0 = vadd.f32 1e-05, %v73_v63 }
 0x166   :  { %v127_v6 = vpop.permute.xlu1 %126 }
 0x167   :  { %282 = vrsqrt.f32 %v77_v0  ;;  %vm131_vm4 = vcmp.lt.s32.totalorder %v111_v51, %v127_v6 }
 0x168   :  { %vm133_vm6 = vmpackc.low %vm131_vm4, %vm130_vm5 }
 0x171   :  { %v283_v3 = vpop.eup %282 }
 0x172   :  { %v85_v4 = vmul.f32 %v283_v3, %v53_v29 }
 0x174   :  { %v96_v7 = vmul.f32 %v244_v44, %v85_v4 }
 0x176   :  { %v107_v8 = vadd.f32 %v245_v49, %v96_v7 }
 0x178   :  { %v109_v10 = vpack.c.bf16 %v107_v8, %v106_v9 }
 0x17a   :  { %v135_v11 = vsel %vm133_vm6, %v109_v10, 0 }
 0x17b   :  { %137 = vst.msk [vmem:[#allocation2 + $0x8] sm:$0xff] %vm32_vm0, %v135_v11 }
 0x182   :  { %v139_v12 = vld [vmem:[#allocation2 + $0x8] sm:$0xff] }
 0x183   :  { %268 = vmatmul.mubr.msk.bf16.vlgmr.msra.gmra.mrb[0].mxu0 %vm32_vm0, %v139_v12 }
 0x256   :  { %v269_v14 = vpop.f32.mrb[0].mxu0 }
 0x257   :  { %v213_v15 = vadd.f32 %v269_v14, %v246_v13  ;;  %v204_v16 = vpop.f32.mrb[1].mxu0 }
 0x258   :  { %v205_v17 = vadd.f32 %v246_v13, %v204_v16  ;;  %v270_v18 = vpop.f32.mrb[2].mxu0 }
 0x259   :  { %v257_v19 = vpack.c.bf16 %v213_v15, %v213_v15  ;;  %v216_v20 = vadd.f32 %v270_v18, %v246_v13  ;;  %v207_v21 = vpop.f32.mrb[3].mxu0 }
 0x25a   :  { %v255_v22 = vpack.c.bf16 %v205_v17, %v205_v17  ;;  %v208_v23 = vadd.f32 %v246_v13, %v207_v21 }
 0x25b   :  { %238 = vst.msk [vmem:[%s394_s6 + $0x8] sm:$0xf] %vm235_vm7, %v257_v19  ;;  %v258_v24 = vpack.c.bf16 %v216_v20, %v216_v20 }
 0x25c   :  { %236 = vst.msk [vmem:[%s394_s6] sm:$0xf] %vm235_vm7, %v255_v22  ;;  %v256_v25 = vpack.c.bf16 %v208_v23, %v208_v23 }
 0x25d   :  { %239 = vst.msk [vmem:[%s394_s6 + $0xc] sm:$0xf] %vm235_vm7, %v258_v24 }
 0x25e   :  { %237 = vst.msk [vmem:[%s394_s6 + $0x4] sm:$0xf] %vm235_vm7, %v256_v25 }

// kernel: nested_experts_block_forward.7
= control target key start
LH: loop header
LB: loop body
LE: loop exit
PB: predicated region body
PF: predicated region fallthrough
CT: control target
= control target key end

     0   :  { %v190_v1 = vmov 0   ;;  %vm58_vm0 = vcmask 261120   ;;  %v115_v9 = vlaneseq  ;;  %v191_v16 = vmov 0.0   ;;  %s279_s1 = inlined_call_operand.vmem [shape: bf16[32,32], index: 1, kind: input, shape index: {}]   ;;  %s280_s0 = inlined_call_operand.vmem [shape: bf16[32,32], index: 0, kind: input, shape index: {}]   ;;  %s281_s3 = inlined_call_operand.vmem [shape: s32[32,1], index: 3, kind: input, shape index: {}]   ;;  %s282_s2 = inlined_call_operand.vmem [shape: f32[1,32], index: 2, kind: input, shape index: {}]   ;;  %s283_s4 = inlined_call_operand.vmem [shape: f32[32,32], index: 4, kind: input, shape index: {}]   ;;  %s284_s5 = inlined_call_operand.vmem [shape: f32[32,32], index: 5, kind: output, shape index: {}]  }
   0x1   :  { %v186_v0 = vld [vmem:[%s279_s1] sm:$0xff]   ;;  %185 = vset.pattern.permute.xlu1 %v190_v1  ;;  %184 = vset.pattern.permute.xlu0 %v190_v1  ;;  %v187_v2 = vld [vmem:[%s279_s1 + $0x8] sm:$0xff]   ;;  %v121_v4 = vld [vmem:[%s281_s3 + $0x10] sm:$0xff] }
   0x2   :  { %174 = vmatprep.subr.bf16.mxu0 %v186_v0  ;;  %v188_v3 = vld [vmem:[%s280_s0] sm:$0xff]   ;;  %130 = vperm.xlu1 %185, %v121_v4   ;;  %v189_v6 = vld [vmem:[%s280_s0 + $0x8] sm:$0xff]   ;;  %v122_v7 = vld [vmem:[%s281_s3 + $0x18] sm:$0xff]  ;;  %v116_v11 = vand.u32 127, %v115_v9 }
   0x3   :  { %175 = vmatpush3.bf16.msra.mxu0 %v186_v0  ;;  %178 = vmatprep.mubr.msk.bf16.mxu0 %vm58_vm0, %v188_v3  ;;  %v119_v5 = vld [vmem:[%s281_s3] sm:$0xff]  ;;  %v120_v8 = vld [vmem:[%s281_s3 + $0x8] sm:$0xff]  ;;  %v145_v21 = vld [vmem:[%s283_s4 + $0x10] sm:$0xff] }
   0x4   :  { %176 = vmatprep.subr.bf16.mxu0 %v187_v2  ;;  %124 = vperm.xlu0 %184, %v119_v5   ;;  %v163_v14 = vld [vmem:[%s282_s2] ss:$0 sm:$0xff]  ;;  %v146_v31 = vld [vmem:[%s283_s4 + $0x18] sm:$0xff]  ;;  %v144_v36 = vld [vmem:[%s283_s4 + $0x8] sm:$0xff] }
   0x5   :  { %v143_v26 = vld [vmem:[%s283_s4] sm:$0xff] }
   0x6   :  { %133 = vperm.xlu1 %185, %v122_v7  }
   0x7   :  { %177 = vmatpush3.bf16.msra.mxu0 %v187_v2 }
   0x8   :  { %127 = vperm.xlu0 %184, %v120_v8  }
   0xa   :  { %179 = vmatmul.mubr.msk.bf16.vlgmr.msra.gmra.mrb[0].mxu0 %vm58_vm0, %v189_v6 }
  0x81   :  { %v131_v10 = vpop.permute.xlu1 %130 }
  0x82   :  { %vm137_vm1 = vcmp.lt.s32.totalorder %v116_v11, %v131_v10 }
  0x83   :  { %v125_v12 = vpop.permute.xlu0 %124  ;;  %v141_v17 = vsel %vm137_vm1, 1.0, %v191_v16 }
  0x84   :  { %vm135_vm2 = vcmp.lt.s32.totalorder %v116_v11, %v125_v12 }
  0x85   :  { %v134_v13 = vpop.permute.xlu1 %133  ;;  %v139_v24 = vsel %vm135_vm2, 1.0, %v191_v16 }
  0x86   :  { %vm138_vm3 = vcmp.lt.s32.totalorder %v116_v11, %v134_v13 }
  0x87   :  { %v128_v15 = vpop.permute.xlu0 %127  ;;  %v142_v29 = vsel %vm138_vm3, 1.0, %v191_v16 }
  0x88   :  { %vm136_vm4 = vcmp.lt.s32.totalorder %v116_v11, %v128_v15 }
  0x89   :  { %v140_v33 = vsel %vm136_vm4, 1.0, %v191_v16 }
  0xdd   :  { %v180_v18 = vpop.f32.mrb[0].mxu0 }
  0xde   :  { %v108_v19 = vadd.f32 %v180_v18, %v163_v14  ;;  %v99_v20 = vpop.f32.mrb[1].mxu0 }
  0xdf   :  { %v100_v22 = vadd.f32 %v163_v14, %v99_v20  ;;  %v181_v23 = vpop.f32.mrb[2].mxu0 }
  0xe0   :  { %v149_v25 = vmul.f32 %v141_v17, %v108_v19  ;;  %v111_v27 = vadd.f32 %v181_v23, %v163_v14  ;;  %v102_v28 = vpop.f32.mrb[3].mxu0 }
  0xe1   :  { %v147_v30 = vmul.f32 %v139_v24, %v100_v22  ;;  %v103_v32 = vadd.f32 %v163_v14, %v102_v28 }
  0xe2   :  { %v153_v34 = vadd.f32 %v149_v25, %v145_v21  ;;  %v150_v35 = vmul.f32 %v142_v29, %v111_v27 }
  0xe3   :  { %v151_v37 = vadd.f32 %v147_v30, %v143_v26  ;;  %v148_v38 = vmul.f32 %v140_v33, %v103_v32 }
  0xe4   :  { %157 = vst.msk [vmem:[%s284_s5 + $0x10] sm:$0xff] %vm58_vm0, %v153_v34  ;;  %v154_v39 = vadd.f32 %v150_v35, %v146_v31 }
  0xe5   :  { %155 = vst.msk [vmem:[%s284_s5] sm:$0xff] %vm58_vm0, %v151_v37  ;;  %v152_v40 = vadd.f32 %v148_v38, %v144_v36 }
  0xe6   :  { %158 = vst.msk [vmem:[%s284_s5 + $0x18] sm:$0xff] %vm58_vm0, %v154_v39 }
  0xe7   :  { %156 = vst.msk [vmem:[%s284_s5 + $0x8] sm:$0xff] %vm58_vm0, %v152_v40 }

// kernel: nested_experts_block_forward.6
= control target key start
LH: loop header
LB: loop body
LE: loop exit
PB: predicated region body
PF: predicated region fallthrough
CT: control target
= control target key end

     0   :  { %s922_s6 = smov 0   ;;  %s1032_s0 = inlined_call_operand.vmem [shape: bf16[2,16,96], index: 0, kind: input, shape index: {}]   ;;  %s1033_s1 = inlined_call_operand.vmem [shape: bf16[2,16,32], index: 1, kind: output, shape index: {}]  }
   0x1 LB: > { %s728_s7 = sadd.s32 4294967295, %s894_s6   ;;  %p732_p0 = scmp.ge.s32.totalorder %s894_s6, 1  ;;  %s894_s6 = sphi %s922_s6, %s11_s6  }
   0x2   : > { %p87_p1 = scmp.lt.s32.totalorder %s894_s6, 3 }
   0x4   : > { %p88_p2 = pnand %p732_p0, %p87_p1 }
   0x5   : > { %p107_p3 = scmp.lt.s32.totalorder (!%p88_p2), %s728_s7, 1  ;;  %v896_v0 = vmov (!%p88_p2), 0.0   ;;  %vm897_vm0 = vmmov (!%p88_p2), 0   ;;  %s898_s12 = smov (!%p88_p2), 96   ;;  %vm135_vm1 = vcmask (!%p88_p2), 64512   ;;  %vm183_vm2 = vcmask (!%p88_p2), 130048  }
   0x6   : > { %91 = sbr.rel (%p88_p2) target bundleno = 1295 (0x50f), region = 24  ;;  %783 = vmatprep.subr.bf16.mxu0 (!%p88_p2), %v896_v0  ;;  %785 = vmatprep.mubr.msk.bf16.mxu0 (!%p88_p2), %vm897_vm0, %v896_v0  ;;  %s899_s13 = smov (!%p88_p2), 64   ;;  %vm262_vm3 = vcmask (!%p88_p2), 60416   ;;  %vm398_vm4 = vcmask (!%p88_p2), 126016   ;;  %vm534_vm5 = vcmask (!%p88_p2), 191616   ;;  %vm670_vm6 = vcmask (!%p88_p2), 257216  }
   0x7   : > { %789 = vmatprep.subr.bf16.mxu1 (!%p88_p2), %v896_v0  ;;  %791 = vmatprep.mubr.msk.bf16.mxu1 (!%p88_p2), %vm897_vm0, %v896_v0  ;;  %s900_s14 = smov (!%p88_p2), 88   ;;  %s901_s15 = smov (!%p88_p2), 120  }
   0x8   : > { %s902_s16 = smov (!%p88_p2), 72   ;;  %s903_s17 = smov (!%p88_p2), 80  }
   0x9   : > { %s904_s18 = smov (!%p88_p2), 112   ;;  %s905_s19 = smov (!%p88_p2), 104  }
   0xa   : > { %s906_s20 = smov (!%p88_p2), 56   ;;  %s907_s21 = smov (!%p88_p2), 48  }
   0xb   : > { %s908_s22 = smov (!%p88_p2), 40   ;;  %s909_s23 = smov (!%p88_p2), 8  }
   0xc   : > { %s910_s27 = smov (!%p88_p2), 16   ;;  %s911_s28 = smov (!%p88_p2), 24  }
   0xd   : > { %s1035_s7 = smov (!%p107_p3, %s728_s7), 1 }
   0xe   : > { %s757_s8 = sshll.u32 %s1035_s7, 3 }
   0xf   : > { %s111_s11 = scalar_lea.vmem %s1032_s0, %s757_s8  ;;  %s1019_s26 = scalar_lea.vmem %s1033_s1, %s757_s8 }
  0x10   : > { %v119_v1 = vld [vmem:[%s111_s11] sm:$0xf]  ;;  %v120_v2 = vld [vmem:[%s111_s11 + $0x4] sm:$0xf] }
  0x11   : > { %v944_v3 = vcombine.low %v119_v1, %v120_v2  ;;  %v121_v4 = vmul.bf16 1052065461, %v119_v1  ;;  %v122_v5 = vmul.bf16 1052065461, %v120_v2 }
  0x13   : > { %133 = vrot.lane.b32.xlu0 %v944_v3, %s898_s12  ;;  %v737_v6 = vcombine.low %v121_v4, %v122_v5  ;;  %203 = vrot.lane.b32.xlu1 %v944_v3, %s899_s13 }
  0x17   : > { %267 = vrot.lane.b32.xlu1 %v944_v3, %s900_s14 }
  0x85   : > { %v134_v7 = vpop.permute.xlu0 %133  ;;  %v204_v9 = vpop.permute.xlu1 %203 }
  0x86   : > { %v140_v8 = vsel %vm135_vm1, %v134_v7, 0  ;;  %790 = vmatpush3.bf16.msra.mxu1 %v204_v9 }
  0x87   : > { %784 = vmatpush3.bf16.xpose.msra.mxu0 %v140_v8  ;;  %795 = vmatprep.subr.bf16.mxu1 %v896_v0 }
  0x88   : > { %801 = vmatprep.subr.bf16.mxu0 %v896_v0 }
  0x89   : > { %v268_v16 = vpop.permute.xlu1 %267 }
  0x8a   : > { %v273_v27 = vsel %vm135_vm1, %v268_v16, 0 }
  0x8e   : > { %786 = vmatmul.mubr.msk.bf16.vlgmr.msra.gmra.mrb[0].mxu0 %vm135_vm1, %v737_v6 }
  0x8f   : > { %803 = vmatprep.mubr.msk.bf16.mxu0 %vm897_vm0, %v896_v0 }
 0x161   : > { %v176_v10 = vpop.f32.mrb[0].mxu0 }
 0x162   : > { %v787_v11 = vpop.f32.mrb[1].mxu0  ;;  %v184_v12 = vsel %vm183_vm2, %v176_v10, -inf }
 0x163   : > { %185 = vmax.xlane.f32.xlu0 %v184_v12  ;;  %v179_v13 = vpop.f32.mrb[2].mxu0 }
 0x164   : > { %v788_v14 = vpop.f32.mrb[3].mxu0  ;;  %v187_v15 = vsel %vm183_vm2, %v179_v13, -inf }
 0x165   : > { %188 = vmax.xlane.f32.xlu1 %v187_v15 }
 0x176   : > { %265 = vrot.lane.b32.xlu1 %v737_v6, %s901_s15 }
 0x179   : > { %539 = vrot.lane.b32.xlu0 %v944_v3, %s902_s16 }
 0x17a   : > { %403 = vrot.lane.b32.xlu1 %v944_v3, %s903_s17 }
 0x17e   : > { %401 = vrot.lane.b32.xlu1 %v737_v6, %s904_s18 }
 0x182   : > { %537 = vrot.lane.b32.xlu1 %v737_v6, %s905_s19 }
 0x1f0   : > { %v186_v17 = vpop.xlane.xlu0 %185 }
 0x1f1   : > { %v190_v18 = vsub.f32 %v176_v10, %v186_v17 }
 0x1f2   : > { %v189_v19 = vpop.xlane.xlu1 %188 }
 0x1f3   : > { %v192_v20 = vmul.f32 1.442695, %v190_v18  ;;  %v191_v21 = vsub.f32 %v179_v13, %v189_v19 }
 0x1f4   : > { %v540_v30 = vpop.permute.xlu0 %539 }
 0x1f5   : > { %v194_v22 = vmul.f32 1.442695, %v191_v21  ;;  %856 = vpow2.f32 %v192_v20  ;;  %v545_v32 = vsel %vm135_vm1, %v540_v30, 0 }
 0x1f6   : > { %v266_v25 = vpop.permute.xlu1 %265 }
 0x1f7   : > { %858 = vpow2.f32 %v194_v22 }
 0x1fa   : > { %v404_v28 = vpop.permute.xlu1 %403 }
 0x1fb   : > { %v409_v29 = vsel %vm135_vm1, %v404_v28, 0 }
 0x1fe   : > { %v402_v31 = vpop.permute.xlu1 %401 }
 0x1ff   : > { %v959_v23 = vpop.eup %856 }
 0x201   : > { %v961_v24 = vpop.eup %858 }
 0x202   : > { %v202_v26 = vpack.c.bf16 %v961_v24, %v959_v23  ;;  %v538_v33 = vpop.permute.xlu1 %537 }
 0x204   : > { %792 = vmatmul.mubr.msk.bf16.vlgmr.msra.gmra.mrb[0].mxu1 %vm183_vm2, %v202_v26 }
 0x205   : > { %796 = vmatpush3.bf16.xpose.msra.mxu1 %v273_v27  ;;  %797 = vmatprep.mubr.msk.bf16.mxu1 %vm897_vm0, %v896_v0 }
 0x206   : > { %807 = vmatprep.subr.bf16.mxu1 %v896_v0 }
 0x20c   : > { %798 = vmatmul.mubr.msk.bf16.vlgmr.msra.gmra.mrb[4].mxu1 %vm135_vm1, %v266_v25 }
 0x20d   : > { %808 = vmatpush3.bf16.xpose.msra.mxu1 %v409_v29  ;;  %809 = vmatprep.mubr.msk.bf16.mxu1 %vm897_vm0, %v896_v0 }
 0x20e   : > { %819 = vmatprep.subr.bf16.mxu1 %v896_v0 }
 0x214   : > { %810 = vmatmul.mubr.msk.bf16.vlgmr.msra.gmra.mrb[8].mxu1 %vm135_vm1, %v402_v31  ;;  %v199_v31 = vsel %vm183_vm2, %v961_v24, 0.0 }
 0x215   : > { %820 = vmatpush3.bf16.xpose.msra.mxu1 %v545_v32  ;;  %821 = vmatprep.mubr.msk.bf16.mxu1 %vm897_vm0, %v896_v0  ;;  %v196_v32 = vsel %vm183_vm2, %v959_v23, 0.0 }
 0x21c   : > { %822 = vmatmul.mubr.msk.bf16.vlgmr.msra.gmra.mrb[12].mxu1 %vm135_vm1, %v538_v33 }
 0x2d7   : > { %v980_v34 = vpop.f32.mrb[0].mxu1 }
 0x2d8   : > { %v793_v35 = vpop.f32.mrb[1].mxu1 }
 0x2d9   : > { %v982_v36 = vpop.f32.mrb[2].mxu1 }
 0x2da   : > { %v794_v37 = vpop.f32.mrb[3].mxu1 }
 0x2df   : > { %v309_v38 = vpop.f32.mrb[4].mxu1 }
 0x2e0   : > { %v799_v39 = vpop.f32.mrb[5].mxu1  ;;  %v316_v40 = vsel %vm183_vm2, %v309_v38, -inf }
 0x2e1   : > { %317 = vmax.xlane.f32.xlu1 %v316_v40  ;;  %v312_v41 = vpop.f32.mrb[6].mxu1 }
 0x2e2   : > { %v800_v42 = vpop.f32.mrb[7].mxu1  ;;  %v319_v43 = vsel %vm183_vm2, %v312_v41, -inf }
 0x2e3   : > { %320 = vmax.xlane.f32.xlu0 %v319_v43 }
 0x2e7   : > { %v445_v44 = vpop.f32.mrb[8].mxu1 }
 0x2e8   : > { %v811_v45 = vpop.f32.mrb[9].mxu1  ;;  %v452_v53 = vsel %vm183_vm2, %v445_v44, -inf }
 0x2e9   : > { %v448_v46 = vpop.f32.mrb[10].mxu1 }
 0x2ea   : > { %v812_v47 = vpop.f32.mrb[11].mxu1  ;;  %v455_v54 = vsel %vm183_vm2, %v448_v46, -inf }
 0x2ef   : > { %v581_v48 = vpop.f32.mrb[12].mxu1 }
 0x2f0   : > { %v823_v49 = vpop.f32.mrb[13].mxu1  ;;  %v588_v55 = vsel %vm183_vm2, %v581_v48, -inf }
 0x2f1   : > { %v584_v50 = vpop.f32.mrb[14].mxu1 }
 0x2f2   : > { %335 = vrot.lane.b32.xlu1 %v944_v3, %s906_s20  ;;  %v591_v51 = vsel %vm183_vm2, %v584_v50, -inf  ;;  %v824_v52 = vpop.f32.mrb[15].mxu1 }
 0x2f3   : > { %592 = vmax.xlane.f32.xlu0 %v591_v51 }
 0x309   : > { %471 = vrot.lane.b32.xlu0 %v944_v3, %s907_s21 }
 0x316   : > { %453 = vmax.xlane.f32.xlu1 %v452_v53 }
 0x31a   : > { %456 = vmax.xlane.f32.xlu1 %v455_v54 }
 0x31e   : > { %589 = vmax.xlane.f32.xlu1 %v588_v55 }
 0x32f   : > { %607 = vrot.lane.b32.xlu1 %v944_v3, %s908_s22 }
 0x36e   : > { %v318_v56 = vpop.xlane.xlu1 %317 }
 0x36f   : > { %v322_v57 = vsub.f32 %v309_v38, %v318_v56 }
 0x370   : > { %v321_v58 = vpop.xlane.xlu0 %320 }
 0x371   : > { %v324_v59 = vmul.f32 1.442695, %v322_v57  ;;  %v323_v60 = vsub.f32 %v312_v41, %v321_v58 }
 0x372   : > { %v336_v61 = vpop.permute.xlu1 %335 }
 0x373   : > { %860 = vpow2.f32 %v324_v59  ;;  %v326_v62 = vmul.f32 1.442695, %v323_v60  ;;  %802 = vmatpush3.bf16.msra.mxu0 %v336_v61 }
 0x374   : > { %813 = vmatprep.subr.bf16.mxu0 %v896_v0 }
 0x375   : > { %862 = vpow2.f32 %v326_v62 }
 0x37d   : > { %v861_v63 = vpop.eup %860 }
 0x37e   : > { %v328_v1 = vsel %vm183_vm2, %v861_v63, 0.0 }
 0x37f   : > { %v863_v2 = vpop.eup %862  ;;  %329 = vadd.xlane.f32.xlu1 %v328_v1 }
 0x380   : > { %v593_v4 = vpop.xlane.xlu0 %592  ;;  %v331_v3 = vsel %vm183_vm2, %v863_v2, 0.0  ;;  %v334_v5 = vpack.c.bf16 %v863_v2, %v861_v63 }
 0x381   : > { %332 = vadd.xlane.f32.xlu0 %v331_v3  ;;  %v595_v9 = vsub.f32 %v584_v50, %v593_v4 }
 0x382   : > { %804 = vmatmul.mubr.msk.bf16.vlgmr.msra.gmra.mrb[4].mxu0 %vm183_vm2, %v334_v5 }
 0x383   : > { %815 = vmatprep.mubr.msk.bf16.mxu0 %vm897_vm0, %v896_v0  ;;  %v598_v13 = vmul.f32 1.442695, %v595_v9 }
 0x384   : > { %v472_v6 = vpop.permute.xlu0 %471 }
 0x385   : > { %814 = vmatpush3.bf16.msra.mxu0 %v472_v6 }
 0x386   : > { %825 = vmatprep.subr.bf16.mxu0 %v896_v0 }
 0x3a3   : > { %v454_v7 = vpop.xlane.xlu1 %453 }
 0x3a4   : > { %v458_v8 = vsub.f32 %v445_v44, %v454_v7 }
 0x3a6   : > { %v460_v10 = vmul.f32 1.442695, %v458_v8 }
 0x3a7   : > { %v457_v11 = vpop.xlane.xlu1 %456 }
 0x3a8   : > { %864 = vpow2.f32 %v460_v10  ;;  %v459_v12 = vsub.f32 %v448_v46, %v457_v11 }
 0x3aa   : > { %v462_v14 = vmul.f32 1.442695, %v459_v12 }
 0x3ab   : > { %v590_v15 = vpop.xlane.xlu1 %589 }
 0x3ac   : > { %866 = vpow2.f32 %v462_v14  ;;  %v594_v16 = vsub.f32 %v581_v48, %v590_v15 }
 0x3ad   : > { %868 = vpow2.f32 %v598_v13 }
 0x3ae   : > { %v596_v17 = vmul.f32 1.442695, %v594_v16 }
 0x3af   : > { %v608_v22 = vpop.permute.xlu1 %607 }
 0x3b0   : > { %870 = vpow2.f32 %v596_v17 }
 0x3b2   : > { %v865_v18 = vpop.eup %864 }
 0x3b3   : > { %v464_v19 = vsel %vm183_vm2, %v865_v18, 0.0 }
 0x3b4   : > { %465 = vadd.xlane.f32.xlu0 %v464_v19 }
 0x3b6   : > { %v867_v20 = vpop.eup %866 }
 0x3b7   : > { %v467_v21 = vsel %vm183_vm2, %v867_v20, 0.0  ;;  %v470_v25 = vpack.c.bf16 %v867_v20, %v865_v18  ;;  %v869_v26 = vpop.eup %868 }
 0x3b8   : > { %468 = vadd.xlane.f32.xlu1 %v467_v21  ;;  %v603_v28 = vsel %vm183_vm2, %v869_v26, 0.0 }
 0x3b9   : > { %816 = vmatmul.mubr.msk.bf16.vlgmr.msra.gmra.mrb[8].mxu0 %vm183_vm2, %v470_v25 }
 0x3ba   : > { %v871_v27 = vpop.eup %870  ;;  %826 = vmatpush3.bf16.msra.mxu0 %v608_v22  ;;  %827 = vmatprep.mubr.msk.bf16.mxu0 %vm897_vm0, %v896_v0 }
 0x3bb   : > { %v600_v29 = vsel %vm183_vm2, %v871_v27, 0.0  ;;  %v606_v30 = vpack.c.bf16 %v869_v26, %v871_v27 }
 0x3bc   : > { %604 = vadd.xlane.f32.xlu1 %v603_v28  ;;  %601 = vadd.xlane.f32.xlu0 %v600_v29 }
 0x3c0   : > { %200 = vadd.xlane.f32.xlu1 %v199_v31  ;;  %197 = vadd.xlane.f32.xlu0 %v196_v32 }
 0x3c1   : > { %828 = vmatmul.mubr.msk.bf16.vlgmr.msra.gmra.mrb[12].mxu0 %vm183_vm2, %v606_v30 }
 0x40c   : > { %v330_v33 = vpop.xlane.xlu1 %329 }
 0x40d   : > { %872 = vrcp.f32 %v330_v33 }
 0x40e   : > { %v333_v35 = vpop.xlane.xlu0 %332 }
 0x40f   : > { %874 = vrcp.f32 %v333_v35 }
 0x417   : > { %v873_v24 = vpop.eup %872 }
 0x419   : > { %v875_v44 = vpop.eup %874 }
 0x441   : > { %v466_v0 = vpop.xlane.xlu0 %465 }
 0x445   : > { %v469_v37 = vpop.xlane.xlu1 %468 }
 0x449   : > { %v602_v38 = vpop.xlane.xlu0 %601  ;;  %v605_v39 = vpop.xlane.xlu1 %604 }
 0x44d   : > { %v198_v40 = vpop.xlane.xlu0 %197  ;;  %v201_v41 = vpop.xlane.xlu1 %200 }
 0x44e   : > { %876 = vrcp.f32 %v198_v40 }
 0x44f   : > { %878 = vrcp.f32 %v201_v41 }
 0x450   : > { %880 = vrcp.f32 %v466_v0 }
 0x451   : > { %882 = vrcp.f32 %v469_v37 }
 0x452   : > { %884 = vrcp.f32 %v602_v38 }
 0x453   : > { %886 = vrcp.f32 %v605_v39 }
 0x455   : > { %v375_v42 = vpop.f32.mrb[4].mxu0 }
 0x456   : > { %v384_v23 = vmul.f32 %v873_v24, %v375_v42  ;;  %v805_v43 = vpop.f32.mrb[5].mxu0 }
 0x457   : > { %v378_v45 = vpop.f32.mrb[6].mxu0 }
 0x458   : > { %v877_v46 = vpop.eup %876  ;;  %v761_v47 = vpack.c.bf16 %v384_v23, %v384_v23  ;;  %v385_v48 = vmul.f32 %v875_v44, %v378_v45  ;;  %v806_v49 = vpop.f32.mrb[7].mxu0 }
 0x459   : > { %v879_v50 = vpop.eup %878  ;;  %v252_v51 = vmul.f32 %v877_v46, %v980_v34 }
 0x45a   : > { %v253_v52 = vmul.f32 %v879_v50, %v982_v36  ;;  %v762_v53 = vpack.c.bf16 %v385_v48, %v385_v48  ;;  %392 = vrot.lane.b32.xlu0 %v761_v47, %s909_s23  ;;  %v881_v34 = vpop.eup %880 }
 0x45b   : > { %v759_v54 = vpack.c.bf16 %v252_v51, %v252_v51  ;;  %v883_v58 = vpop.eup %882 }
 0x45c   : > { %394 = vrot.lane.b32.xlu1 %v762_v53, %s909_s23  ;;  %v760_v55 = vpack.c.bf16 %v253_v52, %v253_v52  ;;  %v885_v1 = vpop.eup %884 }
 0x45d   : > { %263 = vst.msk [vmem:[%s1019_s26] sm:$0xf] %vm262_vm3, %v759_v54  ;;  %v887_v5 = vpop.eup %886 }
 0x45e   : > { %264 = vst.msk [vmem:[%s1019_s26 + $0x4] sm:$0xf] %vm262_vm3, %v760_v55 }
 0x48c   : > { %v511_v36 = vpop.f32.mrb[8].mxu0 }
 0x48d   : > { %v520_v56 = vmul.f32 %v881_v34, %v511_v36  ;;  %v817_v57 = vpop.f32.mrb[9].mxu0 }
 0x48e   : > { %v514_v59 = vpop.f32.mrb[10].mxu0 }
 0x48f   : > { %v763_v60 = vpack.c.bf16 %v520_v56, %v520_v56  ;;  %v521_v61 = vmul.f32 %v883_v58, %v514_v59  ;;  %v818_v62 = vpop.f32.mrb[11].mxu0 }
 0x491   : > { %v764_v63 = vpack.c.bf16 %v521_v61, %v521_v61  ;;  %528 = vrot.lane.b32.xlu1 %v763_v60, %s910_s27 }
 0x493   : > { %530 = vrot.lane.b32.xlu0 %v764_v63, %s910_s27 }
 0x494   : > { %v647_v2 = vpop.f32.mrb[12].mxu0 }
 0x495   : > { %v656_v4 = vmul.f32 %v885_v1, %v647_v2  ;;  %v829_v3 = vpop.f32.mrb[13].mxu0 }
 0x496   : > { %v650_v6 = vpop.f32.mrb[14].mxu0 }
 0x497   : > { %v765_v7 = vpack.c.bf16 %v656_v4, %v656_v4  ;;  %v657_v8 = vmul.f32 %v887_v5, %v650_v6  ;;  %v830_v9 = vpop.f32.mrb[15].mxu0 }
 0x499   : > { %v766_v10 = vpack.c.bf16 %v657_v8, %v657_v8  ;;  %664 = vrot.lane.b32.xlu1 %v765_v7, %s911_s28 }
 0x49b   : > { %666 = vrot.lane.b32.xlu0 %v766_v10, %s911_s28 }
 0x4cc   : > { %v393_v11 = vpop.permute.xlu0 %392 }
 0x4cd   : > { %399 = vst.msk [vmem:[%s1019_s26] sm:$0xf] %vm398_vm4, %v393_v11 }
 0x4ce   : > { %v395_v12 = vpop.permute.xlu1 %394 }
 0x4cf   : > { %400 = vst.msk [vmem:[%s1019_s26 + $0x4] sm:$0xf] %vm398_vm4, %v395_v12 }
 0x503   : > { %v529_v13 = vpop.permute.xlu1 %528 }
 0x504   : > { %535 = vst.msk [vmem:[%s1019_s26] sm:$0xf] %vm534_vm5, %v529_v13 }
 0x505   : > { %v531_v14 = vpop.permute.xlu0 %530 }
 0x506   : > { %536 = vst.msk [vmem:[%s1019_s26 + $0x4] sm:$0xf] %vm534_vm5, %v531_v14 }
 0x50b   : > { %v665_v15 = vpop.permute.xlu1 %664 }
 0x50c   : > { %671 = vst.msk [vmem:[%s1019_s26] sm:$0xf] %vm670_vm6, %v665_v15 }
 0x50d   : > { %v667_v16 = vpop.permute.xlu0 %666 }
 0x50e   : > { %672 = vst.msk [vmem:[%s1019_s26 + $0x4] sm:$0xf] %vm670_vm6, %v667_v16 }
 0x50f PF: > { %s11_s6 = sadd.s32 1, %s894_s6  }
 0x510   : > { %p8_p4 = scmp.ge.s32.totalorder %s11_s6, 4  }
 0x512   :  { %10 = sbr.rel (!%p8_p4) target bundleno = 1 (0x1), region = 54 }

// kernel: nested_experts_block_forward.8
= control target key start
LH: loop header
LB: loop body
LE: loop exit
PB: predicated region body
PF: predicated region fallthrough
CT: control target
= control target key end

     0   :  { %vm32_vm0 = vcmask 261120   ;;  %v338_v8 = vmov 0   ;;  %v110_v45 = vlaneseq  ;;  %s436_s0 = inlined_call_operand.vmem [shape: f32[32,32], index: 0, kind: input, shape index: {}]   ;;  %s437_s5 = inlined_call_operand.vmem [shape: s32[32,1], index: 5, kind: input, shape index: {}]   ;;  %s438_s3 = inlined_call_operand.vmem [shape: bf16[32,128], index: 3, kind: input, shape index: {}]   ;;  %s439_s1 = inlined_call_operand.vmem [shape: f32[1,32], index: 1, kind: input, shape index: {}]   ;;  %s440_s2 = inlined_call_operand.vmem [shape: f32[1,32], index: 2, kind: input, shape index: {}]   ;;  %s441_s4 = inlined_call_operand.vmem [shape: f32[1,128], index: 4, kind: input, shape index: {}]   ;;  %s442_s6 = inlined_call_operand.vmem [shape: bf16[32,128], index: 6, kind: output, shape index: {}]  }
   0x1   :  { %v28_v0 = vld [vmem:[%s436_s0] sm:$0xff]  ;;  %v30_v1 = vld [vmem:[%s436_s0 + $0x10] sm:$0xff]  ;;  %v29_v2 = vld [vmem:[%s436_s0 + $0x8] sm:$0xff]  ;;  %319 = vset.pattern.permute.xlu1 %v338_v8  ;;  %318 = vset.pattern.permute.xlu0 %v338_v8 }
   0x2   :  { %v33_v3 = vsel %vm32_vm0, %v28_v0, 0.0  ;;  %v39_v4 = vsel %vm32_vm0, %v30_v1, 0.0  ;;  %v31_v5 = vld [vmem:[%s436_s0 + $0x18] sm:$0xff]  ;;  %v36_v6 = vsel %vm32_vm0, %v29_v2, 0.0  ;;  %v113_v24 = vld [vmem:[%s437_s5 + $0x8] sm:$0xff]  ;;  %v114_v25 = vld [vmem:[%s437_s5 + $0x10] sm:$0xff] }
   0x3   :  { %34 = vadd.xlane.f32.xlu0 %v33_v3  ;;  %40 = vadd.xlane.f32.xlu1 %v39_v4  ;;  %v42_v7 = vsel %vm32_vm0, %v31_v5, 0.0  ;;  %v112_v26 = vld [vmem:[%s437_s5] sm:$0xff]  ;;  %v115_v32 = vld [vmem:[%s437_s5 + $0x18] sm:$0xff]  ;;  %v321_v34 = vld [vmem:[%s438_s3 + $0x8] sm:$0xff]   ;;  %v111_v51 = vand.u32 127, %v110_v45 }
   0x4   :  { %v320_v33 = vld [vmem:[%s438_s3] sm:$0xff]  }
   0x5   :  { %309 = vmatprep.subr.bf16.mxu0 %v320_v33  ;;  %v279_v44 = vld [vmem:[%s439_s1] ss:$0 sm:$0xff] }
   0x6   :  { %310 = vmatpush3.bf16.msra.mxu0 %v320_v33  ;;  %v280_v49 = vld [vmem:[%s440_s2] ss:$0 sm:$0xff] }
   0x7   :  { %37 = vadd.xlane.f32.xlu0 %v36_v6  ;;  %43 = vadd.xlane.f32.xlu1 %v42_v7 }
   0x8   :  { %311 = vmatprep.subr.bf16.mxu0 %v321_v34 }
   0xa   :  { %312 = vmatpush3.bf16.msra.mxu0 %v321_v34 }
  0x90   :  { %v35_v9 = vpop.xlane.xlu0 %34  ;;  %v41_v10 = vpop.xlane.xlu1 %40 }
  0x91   :  { %v46_v11 = vmul.f32 0.03125, %v35_v9  ;;  %v48_v12 = vmul.f32 0.03125, %v41_v10 }
  0x93   :  { %v50_v13 = vsub.f32 %v28_v0, %v46_v11  ;;  %v390_v14 = vsub.f32 %v30_v1, %v48_v12 }
  0x94   :  { %v38_v15 = vpop.xlane.xlu0 %37  ;;  %v44_v27 = vpop.xlane.xlu1 %43 }
  0x95   :  { %v47_v16 = vmul.f32 0.03125, %v38_v15  ;;  %v54_v17 = vmul.f32 %v50_v13, %v50_v13  ;;  %v56_v18 = vmul.f32 %v390_v14, %v390_v14  ;;  %v49_v28 = vmul.f32 0.03125, %v44_v27 }
  0x97   :  { %v51_v19 = vsub.f32 %v29_v2, %v47_v16  ;;  %v58_v20 = vsel %vm32_vm0, %v54_v17, 0.0  ;;  %v64_v21 = vsel %vm32_vm0, %v56_v18, 0.0  ;;  %v53_v29 = vsub.f32 %v31_v5, %v49_v28 }
  0x98   :  { %59 = vadd.xlane.f32.xlu0 %v58_v20 }
  0x99   :  { %v55_v22 = vmul.f32 %v51_v19, %v51_v19  ;;  %v57_v30 = vmul.f32 %v53_v29, %v53_v29 }
  0x9b   :  { %v61_v23 = vsel %vm32_vm0, %v55_v22, 0.0  ;;  %v67_v31 = vsel %vm32_vm0, %v57_v30, 0.0 }
  0x9c   :  { %65 = vadd.xlane.f32.xlu0 %v64_v21  ;;  %62 = vadd.xlane.f32.xlu1 %v61_v23 }
  0xad   :  { %120 = vperm.xlu1 %319, %v113_v24  }
  0xb1   :  { %123 = vperm.xlu1 %319, %v114_v25  }
  0xb2   :  { %117 = vperm.xlu0 %318, %v112_v26  }
  0xd5   :  { %68 = vadd.xlane.f32.xlu1 %v67_v31 }
  0xe6   :  { %126 = vperm.xlu1 %319, %v115_v32  }
 0x125   :  { %v60_v35 = vpop.xlane.xlu0 %59 }
 0x126   :  { %v70_v36 = vmul.f32 0.03125, %v60_v35 }
 0x128   :  { %v74_v37 = vadd.f32 1e-05, %v70_v36 }
 0x129   :  { %v63_v38 = vpop.xlane.xlu1 %62  ;;  %v66_v43 = vpop.xlane.xlu0 %65 }
 0x12a   :  { %322 = vrsqrt.f32 %v74_v37  ;;  %v71_v39 = vmul.f32 0.03125, %v63_v38  ;;  %v72_v59 = vmul.f32 0.03125, %v66_v43 }
 0x12c   :  { %v75_v40 = vadd.f32 1e-05, %v71_v39  ;;  %v76_v60 = vadd.f32 1e-05, %v72_v59 }
 0x12d   :  { %v121_v53 = vpop.permute.xlu1 %120 }
 0x12e   :  { %324 = vrsqrt.f32 %v75_v40  ;;  %vm129_vm2 = vcmp.lt.s32.totalorder %v111_v51, %v121_v53 }
 0x12f   :  { %326 = vrsqrt.f32 %v76_v60 }
 0x131   :  { %v118_v50 = vpop.permute.xlu0 %117  ;;  %v124_v61 = vpop.permute.xlu1 %123 }
 0x132   :  { %vm128_vm1 = vcmp.lt.s32.totalorder %v111_v51, %v118_v50  ;;  %vm130_vm5 = vcmp.lt.s32.totalorder %v111_v51, %v124_v61 }
 0x133   :  { %vm132_vm3 = vmpackc.low %vm129_vm2, %vm128_vm1 }
 0x134   :  { %v323_v41 = vpop.eup %322 }
 0x135   :  { %v82_v42 = vmul.f32 %v323_v41, %v50_v13  ;;  %v281_v13 = vld [vmem:[%s441_s4] ss:$0 sm:$0xff] }
 0x137   :  { %v93_v48 = vmul.f32 %v279_v44, %v82_v42 }
 0x138   :  { %v325_v46 = vpop.eup %324 }
 0x139   :  { %v83_v47 = vmul.f32 %v325_v46, %v51_v19  ;;  %v104_v54 = vadd.f32 %v280_v49, %v93_v48  ;;  %v327_v1 = vpop.eup %326 }
 0x13a   :  { %v84_v2 = vmul.f32 %v327_v1, %v390_v14 }
 0x13b   :  { %v94_v52 = vmul.f32 %v279_v44, %v83_v47 }
 0x13c   :  { %v95_v5 = vmul.f32 %v279_v44, %v84_v2 }
 0x13d   :  { %v105_v55 = vadd.f32 %v280_v49, %v94_v52 }
 0x13e   :  { %v106_v9 = vadd.f32 %v280_v49, %v95_v5 }
 0x13f   :  { %v108_v56 = vpack.c.bf16 %v105_v55, %v104_v54 }
 0x141   :  { %v134_v57 = vsel %vm132_vm3, %v108_v56, 0 }
 0x142   :  { %136 = vst.msk [vmem:[#allocation2] sm:$0xff] %vm32_vm0, %v134_v57 }
 0x149   :  { %v138_v58 = vld [vmem:[#allocation2] sm:$0xff] }
 0x14a   :  { %313 = vmatprep.mubr.msk.bf16.mxu0 %vm32_vm0, %v138_v58 }
 0x162   :  { %v69_v62 = vpop.xlane.xlu1 %68 }
 0x163   :  { %v73_v63 = vmul.f32 0.03125, %v69_v62 }
 0x165   :  { %v77_v0 = vadd.f32 1e-05, %v73_v63 }
 0x166   :  { %v127_v6 = vpop.permute.xlu1 %126 }
 0x167   :  { %328 = vrsqrt.f32 %v77_v0  ;;  %vm131_vm4 = vcmp.lt.s32.totalorder %v111_v51, %v127_v6 }
 0x168   :  { %vm133_vm6 = vmpackc.low %vm131_vm4, %vm130_vm5 }
 0x171   :  { %v329_v3 = vpop.eup %328 }
 0x172   :  { %v85_v4 = vmul.f32 %v329_v3, %v53_v29 }
 0x174   :  { %v96_v7 = vmul.f32 %v279_v44, %v85_v4 }
 0x176   :  { %v107_v8 = vadd.f32 %v280_v49, %v96_v7 }
 0x178   :  { %v109_v10 = vpack.c.bf16 %v107_v8, %v106_v9 }
 0x17a   :  { %v135_v11 = vsel %vm133_vm6, %v109_v10, 0 }
 0x17b   :  { %137 = vst.msk [vmem:[#allocation2 + $0x8] sm:$0xff] %vm32_vm0, %v135_v11 }
 0x182   :  { %v139_v12 = vld [vmem:[#allocation2 + $0x8] sm:$0xff] }
 0x183   :  { %314 = vmatmul.mubr.msk.bf16.vlgmr.msra.gmra.mrb[0].mxu0 %vm32_vm0, %v139_v12 }
 0x256   :  { %v315_v14 = vpop.f32.mrb[0].mxu0 }
 0x257   :  { %v213_v15 = vadd.f32 %v315_v14, %v281_v13  ;;  %v204_v16 = vpop.f32.mrb[1].mxu0 }
 0x258   :  { %v205_v17 = vadd.f32 %v281_v13, %v204_v16  ;;  %v316_v18 = vpop.f32.mrb[2].mxu0 }
 0x259   :  { %v225_v19 = vmul.f32 %v213_v15, %v213_v15  ;;  %v216_v20 = vadd.f32 %v316_v18, %v281_v13  ;;  %v207_v21 = vpop.f32.mrb[3].mxu0  ;;  %v221_v48 = vmul.f32 0.5, %v213_v15 }
 0x25a   :  { %v223_v22 = vmul.f32 %v205_v17, %v205_v17  ;;  %v208_v23 = vadd.f32 %v281_v13, %v207_v21  ;;  %v219_v51 = vmul.f32 0.5, %v205_v17 }
 0x25b   :  { %v229_v24 = vmul.f32 %v225_v19, %v213_v15  ;;  %v226_v25 = vmul.f32 %v216_v20, %v216_v20  ;;  %v222_v49 = vmul.f32 0.5, %v216_v20 }
 0x25c   :  { %v227_v26 = vmul.f32 %v223_v22, %v205_v17  ;;  %v224_v27 = vmul.f32 %v208_v23, %v208_v23  ;;  %v220_v52 = vmul.f32 0.5, %v208_v23 }
 0x25d   :  { %v233_v28 = vmul.f32 0.044715, %v229_v24  ;;  %v230_v29 = vmul.f32 %v226_v25, %v216_v20 }
 0x25e   :  { %v231_v30 = vmul.f32 0.044715, %v227_v26  ;;  %v228_v31 = vmul.f32 %v224_v27, %v208_v23 }
 0x25f   :  { %v237_v32 = vadd.f32 %v233_v28, %v213_v15  ;;  %v234_v33 = vmul.f32 0.044715, %v230_v29 }
 0x260   :  { %v235_v34 = vadd.f32 %v231_v30, %v205_v17  ;;  %v232_v35 = vmul.f32 0.044715, %v228_v31 }
 0x261   :  { %v241_v36 = vmul.f32 0.7978846, %v237_v32  ;;  %v238_v37 = vadd.f32 %v234_v33, %v216_v20 }
 0x262   :  { %v239_v38 = vmul.f32 0.7978846, %v235_v34  ;;  %v236_v39 = vadd.f32 %v232_v35, %v208_v23 }
 0x263   :  { %330 = vtanh.f32 %v241_v36  ;;  %v242_v40 = vmul.f32 0.7978846, %v238_v37 }
 0x264   :  { %332 = vtanh.f32 %v239_v38  ;;  %v240_v41 = vmul.f32 0.7978846, %v236_v39 }
 0x265   :  { %334 = vtanh.f32 %v242_v40 }
 0x266   :  { %336 = vtanh.f32 %v240_v41 }
 0x26d   :  { %v331_v42 = vpop.eup %330 }
 0x26e   :  { %v333_v43 = vpop.eup %332  ;;  %v249_v44 = vadd.f32 1.0, %v331_v42 }
 0x26f   :  { %v335_v45 = vpop.eup %334  ;;  %v247_v46 = vadd.f32 1.0, %v333_v43 }
 0x270   :  { %v337_v47 = vpop.eup %336  ;;  %v250_v50 = vadd.f32 1.0, %v335_v45  ;;  %v253_v54 = vmul.f32 %v249_v44, %v221_v48 }
 0x271   :  { %v248_v53 = vadd.f32 1.0, %v337_v47  ;;  %v251_v56 = vmul.f32 %v247_v46, %v219_v51 }
 0x272   :  { %v254_v55 = vmul.f32 %v250_v50, %v222_v49 }
 0x273   :  { %v252_v57 = vmul.f32 %v248_v53, %v220_v52 }
 0x274   :  { %v302_v58 = vpack.c.bf16 %v254_v55, %v253_v54 }
 0x275   :  { %v297_v59 = vpack.c.bf16 %v252_v57, %v251_v56 }
 0x276   :  { %304 = vst [vmem:[%s442_s6 + $0x8] sm:$0xff] %v302_v58  }
 0x277   :  { %298 = vst [vmem:[%s442_s6] sm:$0xff] %v297_v59  }

// kernel: nested_experts_block_forward.9
= control target key start
LH: loop header
LB: loop body
LE: loop exit
PB: predicated region body
PF: predicated region fallthrough
CT: control target
= control target key end

     0   :  { %v328_v2 = vmov 0   ;;  %s453_s0 = inlined_call_operand.vmem [shape: bf16[32,128], index: 0, kind: input, shape index: {}]   ;;  %s454_s1 = inlined_call_operand.vmem [shape: bf16[128,32], index: 1, kind: input, shape index: {}]   ;;  %s455_s2 = inlined_call_operand.vmem [shape: f32[1,32], index: 2, kind: input, shape index: {}]   ;;  %s456_s3 = inlined_call_operand.vmem [shape: s32[32,1], index: 3, kind: input, shape index: {}]   ;;  %s457_s4 = inlined_call_operand.vmem [shape: f32[32,32], index: 4, kind: input, shape index: {}]   ;;  %s458_s5 = inlined_call_operand.vmem [shape: f32[32,1], index: 5, kind: input, shape index: {}]   ;;  %s459_s6 = inlined_call_operand.hbm [shape: f32[32,32], index: 6, kind: output, shape index: {}]  }
   0x1   :  { %v294_v0 = vld [vmem:[%s454_s1] sm:$0xff]   ;;  %v295_v1 = vld [vmem:[%s454_s1 + $0x8] sm:$0xff]   ;;  %293 = vset.pattern.permute.xlu1 %v328_v2  ;;  %292 = vset.pattern.permute.xlu0 %v328_v2  ;;  %v296_v3 = vld [vmem:[%s454_s1 + $0x10] sm:$0xff]  }
   0x2   :  { %268 = vmatprep.subr.bf16.mxu0 %v294_v0  ;;  %v297_v4 = vld [vmem:[%s454_s1 + $0x18] sm:$0xff]   ;;  %v302_v5 = vld [vmem:[%s453_s0] sm:$0xff]   ;;  %v172_v6 = vld [vmem:[%s456_s3 + $0x10] sm:$0xff] }
   0x3   :  { %269 = vmatpush3.bf16.msra.mxu0 %v294_v0  ;;  %284 = vmatprep.mubr.bf16.mxu0 %v302_v5  ;;  %v170_v7 = vld [vmem:[%s456_s3] sm:$0xff]  ;;  %v173_v9 = vld [vmem:[%s456_s3 + $0x18] sm:$0xff] }
   0x4   :  { %270 = vmatprep.subr.bf16.mxu0 %v295_v1  ;;  %181 = vperm.xlu1 %293, %v172_v6   ;;  %v298_v8 = vld [vmem:[%s454_s1 + $0x20] sm:$0xff]  }
   0x5   :  { %175 = vperm.xlu0 %292, %v170_v7  }
   0x7   :  { %271 = vmatpush3.bf16.msra.mxu0 %v295_v1 }
   0x8   :  { %272 = vmatprep.subr.bf16.mxu0 %v296_v3 }
   0xb   :  { %273 = vmatpush3.bf16.msra.mxu0 %v296_v3 }
   0xc   :  { %274 = vmatprep.subr.bf16.mxu0 %v297_v4 }
   0xd   :  { %11 = vsyncpa [#allocation3], 0  ;;  %v171_v10 = vld [vmem:[%s456_s3 + $0x8] sm:$0xff]  ;;  %184 = vperm.xlu1 %293, %v173_v9   ;;  %v166_v13 = vld [vmem:[%s458_s5] sm:$0xff]  ;;  %v162_v23 = vlaneseq  ;;  %vm226_vm4 = vcmask 261120   ;;  %s329_s12 = smov [#allocation2]  }
   0xe   :  { %v299_v11 = vld [vmem:[%s454_s1 + $0x28] sm:$0xff]   ;;  %178 = vperm.xlu0 %292, %v171_v10   ;;  %v300_v14 = vld [vmem:[%s454_s1 + $0x30] sm:$0xff]   ;;  %v169_v15 = vld [vmem:[%s458_s5 + $0x18] sm:$0xff]  ;;  %s236_s13 = sshll.u32 %s329_s12, 4  ;;  %s237_s13 = int_to_ptr.vmem [resolvable:$true] %s236_s13 }
   0xf   :  { %275 = vmatpush3.bf16.msra.mxu0 %v297_v4  ;;  %v167_v12 = vld [vmem:[%s458_s5 + $0x8] sm:$0xff]  ;;  %v168_v16 = vld [vmem:[%s458_s5 + $0x10] sm:$0xff]  ;;  %v301_v17 = vld [vmem:[%s454_s1 + $0x38] sm:$0xff]   ;;  %v163_v25 = vand.u32 127, %v162_v23  ;;  %s304_s16 = scalar_lea.vmem %s237_s13, 512  ;;  %p309_p1 = scmp.lt.s32.totalorder %s237_s13, %s237_s13 }
  0x10   :  { %276 = vmatprep.subr.bf16.mxu0 %v298_v8  ;;  %v303_v18 = vld [vmem:[%s453_s0 + $0x8] sm:$0xff]   ;;  %v247_v27 = vld [vmem:[%s455_s2] ss:$0 sm:$0xff]  ;;  %v216_v34 = vld [vmem:[%s457_s4 + $0x10] sm:$0xff]  ;;  %p305_p0 = scmp.ne.s32.totalorder %s237_s13, %s304_s16  ;;  %p310_p2 = scmp.lt.s32.totalorder %s304_s16, %s304_s16 }
  0x11   :  { %197 = vperm.xlu1 %293, %v167_v12   ;;  %v214_v39 = vld [vmem:[%s457_s4] sm:$0xff]  ;;  %v217_v44 = vld [vmem:[%s457_s4 + $0x18] sm:$0xff]  ;;  %v215_v49 = vld [vmem:[%s457_s4 + $0x8] sm:$0xff] }
  0x12   :  { %192 = vperm.xlu0 %292, %v166_v13   ;;  %p311_p3 = por %p310_p2, %p309_p1 }
  0x13   :  { %277 = vmatpush3.bf16.msra.mxu0 %v298_v8 }
  0x14   :  { %278 = vmatprep.subr.bf16.mxu0 %v299_v11  ;;  %p312_p4 = pnand %p311_p3, %p305_p0 }
  0x15   :  { %207 = vperm.xlu1 %293, %v169_v15  }
  0x16   :  { %202 = vperm.xlu0 %292, %v168_v16  }
  0x17   :  { %279 = vmatpush3.bf16.msra.mxu0 %v299_v11 }
  0x18   :  { %280 = vmatprep.subr.bf16.mxu0 %v300_v14 }
  0x1b   :  { %281 = vmatpush3.bf16.msra.mxu0 %v300_v14 }
  0x1c   :  { %282 = vmatprep.subr.bf16.mxu0 %v301_v17 }
  0x1f   :  { %283 = vmatpush3.bf16.msra.mxu0 %v301_v17 }
  0x22   :  { %285 = vmatmul.mubr.bf16.vlgmr.msra.gmra.mrb[0].mxu0 %v303_v18 }
  0x83   :  { %v182_v20 = vpop.permute.xlu1 %181 }
  0x84   :  { %v176_v19 = vpop.permute.xlu0 %175  ;;  %vm188_vm0 = vcmp.lt.s32.totalorder %v163_v25, %v182_v20 }
  0x85   :  { %vm186_vm1 = vcmp.lt.s32.totalorder %v163_v25, %v176_v19 }
  0x8c   :  { %v185_v22 = vpop.permute.xlu1 %184 }
  0x8d   :  { %v179_v21 = vpop.permute.xlu0 %178  ;;  %vm189_vm2 = vcmp.lt.s32.totalorder %v163_v25, %v185_v22 }
  0x8e   :  { %vm187_vm3 = vcmp.lt.s32.totalorder %v163_v25, %v179_v21 }
  0x90   :  { %v198_v26 = vpop.permute.xlu1 %197 }
  0x91   :  { %v193_v24 = vpop.permute.xlu0 %192  ;;  %v211_v46 = vsel %vm187_vm3, %v198_v26, 0.0 }
  0x92   :  { %v210_v37 = vsel %vm186_vm1, %v193_v24, 0.0 }
  0x94   :  { %v208_v30 = vpop.permute.xlu1 %207 }
  0x95   :  { %v203_v28 = vpop.permute.xlu0 %202  ;;  %v213_v42 = vsel %vm189_vm2, %v208_v30, 0.0 }
  0x96   :  { %v212_v33 = vsel %vm188_vm0, %v203_v28, 0.0 }
  0xf5   :  { %v286_v29 = vpop.f32.mrb[0].mxu0 }
  0xf6   :  { %v155_v31 = vadd.f32 %v286_v29, %v247_v27  ;;  %v146_v32 = vpop.f32.mrb[1].mxu0 }
  0xf7   :  { %v147_v35 = vadd.f32 %v247_v27, %v146_v32  ;;  %v287_v36 = vpop.f32.mrb[2].mxu0 }
  0xf8   :  { %v220_v38 = vmul.f32 %v212_v33, %v155_v31  ;;  %v158_v40 = vadd.f32 %v287_v36, %v247_v27  ;;  %v149_v41 = vpop.f32.mrb[3].mxu0 }
  0xf9   :  { %v218_v43 = vmul.f32 %v210_v37, %v147_v35  ;;  %v150_v45 = vadd.f32 %v247_v27, %v149_v41 }
  0xfa   :  { %v224_v47 = vadd.f32 %v220_v38, %v216_v34  ;;  %v221_v48 = vmul.f32 %v213_v42, %v158_v40 }
  0xfb   :  { %v222_v50 = vadd.f32 %v218_v43, %v214_v39  ;;  %v219_v51 = vmul.f32 %v211_v46, %v150_v45 }
  0xfc   :  { %229 = vst.msk [vmem:[#allocation2 + $0x10] sm:$0xff] %vm226_vm4, %v224_v47  ;;  %v225_v52 = vadd.f32 %v221_v48, %v217_v44 }
  0xfd   :  { %227 = vst.msk [vmem:[#allocation2] sm:$0xff] %vm226_vm4, %v222_v50  ;;  %v223_v53 = vadd.f32 %v219_v51, %v215_v49 }
  0xfe   :  { %230 = vst.msk [vmem:[#allocation2 + $0x18] sm:$0xff] %vm226_vm4, %v225_v52 }
  0xff   :  { %228 = vst.msk [vmem:[#allocation2 + $0x8] sm:$0xff] %vm226_vm4, %v223_v53 }
 0x100   :  { %315 = shalt.err (!%p312_p4)
}
 0x101   :  { %s316_s18 = scalar_lea.hbm %s459_s6, 512 }
 0x102   :  { %p317_p5 = scmp.ne.s32.totalorder %s459_s6, %s316_s18  ;;  %p320_p6 = scmp.lt.u32.totalorder %s316_s18, %s459_s6 }
 0x104   :  { %p322_p7 = pnand %p320_p6, %p317_p5 }
 0x106   :  { %325 = shalt.err (!%p322_p7)
}
 0x107   :  { %s330_s3 = smov 128   ;;  %s331_s23 = smov 8  }
 0x108   :  { %242 = dma.vmem_to_hbm [thread:$0]  %s237_s13, 512, %s459_s6, [#allocation3], %s330_s3, %s330_s3, %s331_s23  }
 0x109   :  { %326 = dma.done.wait [#allocation3], 512  }
 0x10a   :  { %327 = vsyncadd [#allocation3], 4294966784 }
 0x10b   :  { %246 = vsyncpa [#allocation3], 1 }

</bundles_post_ra>
